<compile_context>
chip_gen: v7x
topology: tpu7x:2x2x1
jax: 0.10.0
libtpu: 0.0.40
codegen_flags: <defaults>
</compile_context>

<pallas_src>
import functools

import numpy as np
import jax
import jax.numpy as jnp
from jax.experimental import pallas as pl
from jax.experimental.pallas import tpu as pltpu


def _round_up(x, m):
    return (x + m - 1) // m * m


# ----------------------------------------------------------------------------
# Pallas kernel: fused matmul + {bias | BatchNorm} + {none | relu | sigmoid}
# ----------------------------------------------------------------------------
def _fused_matmul_kernel(a_ref, w_ref, *refs, fuse_bn, activation, eps=1e-5):
    # bf16 MXU feed, f32 accumulation (single K block -> no scratch round trip)
    acc = jnp.dot(a_ref[...], w_ref[...], preferred_element_type=jnp.float32)

    if fuse_bn:
        gamma_ref, beta_ref, pool_ref, o_ref = refs
        # Training-mode BatchNorm2d over all rows of this tile (the wrapper
        # guarantees the full M dimension lives in one tile).  Zero-padded
        # rows/columns contribute zero to the sums; the pool matrix carries
        # 1/count and the per-channel column grouping (identity for convs,
        # 4-phase grouping for the sub-pixel deconvs).
        col_s = jnp.sum(acc, axis=0, keepdims=True)                 # (1, tn)
        col_q = jnp.sum(acc * acc, axis=0, keepdims=True)           # (1, tn)
        mean = jnp.dot(col_s, pool_ref[...],
                       preferred_element_type=jnp.float32)          # (1, tn)
        ex2 = jnp.dot(col_q, pool_ref[...],
                      preferred_element_type=jnp.float32)           # (1, tn)
        var = ex2 - mean * mean                                     # biased
        scale = gamma_ref[...] * jax.lax.rsqrt(var + eps)
        # (y - E[y]) == (acc - E[acc]): the conv bias cancels under batch-stat
        # normalization, so it is not an input here.
        out = jnp.maximum((acc - mean) * scale + beta_ref[...], 0.0)
    else:
        bias_ref, o_ref = refs
        out = acc + bias_ref[...]
        if activation == "relu":
            out = jnp.maximum(out, 0.0)
        elif activation == "sigmoid":
            out = jax.nn.sigmoid(out)

    o_ref[...] = out.astype(o_ref.dtype)


def fused_matmul(a_bf16, w_packed, *, n_out, bias=None, bn_cols=None,
                 pool=None, activation="none", out_dtype=jnp.float32):
    """a_bf16: (M, K) bf16; w_packed: (Kp, Np) bf16 pre-padded (Np % 128 == 0).

    bias: (1, Np) f32 (non-BN layers).  bn_cols: (gamma_cols, beta_cols) each
    (1, Np) f32; pool: (Np, Np) f32 per-channel averaging matrix (BN layers).
    Returns (M, n_out) in `out_dtype`."""
    M, K = a_bf16.shape
    Kp, Np = w_packed.shape
    # Single-K-block kernel: every K in this model is <= 2048.
    # TODO(synk): reinstate a K-split accumulator path for larger K.
    assert Kp <= 2048

    Mp = _round_up(M, 8)
    if (Mp, Kp) != (M, K):
        # residual padding done on the bf16 tensor (cheap, fuses with im2col)
        a_bf16 = jnp.pad(a_bf16, ((0, Mp - M), (0, Kp - K)))

    fuse_bn = bn_cols is not None
    # N tiling: BN fusion needs all rows + all same-channel columns in one
    # tile (always true here: Np == 128).  Wider non-BN layers would get a
    # "parallel" N axis (megacore) for free.
    tn = Np if (fuse_bn or Np <= 512) else (
        512 if Np % 512 == 0 else (256 if Np % 256 == 0 else 128))
    grid = (Np // tn,)

    # VMEM: (A + W)*2B + out*{2,4}B + pool*4B  ~0.4 MiB worst case here, far
    # below the v7x 32 MiB scoped default (64 MiB physical) and v5e/v6e 128 MiB.
    if fuse_bn:
        gamma_cols, beta_cols = bn_cols
        in_specs = [
            pl.BlockSpec((Mp, Kp), lambda j: (0, 0)),
            pl.BlockSpec((Kp, tn), lambda j: (0, j)),
            pl.BlockSpec((1, tn), lambda j: (0, j)),
            pl.BlockSpec((1, tn), lambda j: (0, j)),
            pl.BlockSpec((tn, tn), lambda j: (j, j)),
        ]
        operands = (a_bf16, w_packed, gamma_cols, beta_cols, pool)
    else:
        in_specs = [
            pl.BlockSpec((Mp, Kp), lambda j: (0, 0)),
            pl.BlockSpec((Kp, tn), lambda j: (0, j)),
            pl.BlockSpec((1, tn), lambda j: (0, j)),
        ]
        operands = (a_bf16, w_packed, bias)

    out = pl.pallas_call(
        functools.partial(_fused_matmul_kernel, fuse_bn=fuse_bn,
                          activation=activation),
        out_shape=jax.ShapeDtypeStruct((Mp, Np), out_dtype),
        grid=grid,
        in_specs=in_specs,
        out_specs=pl.BlockSpec((Mp, tn), lambda j: (0, j)),
        compiler_params=pltpu.CompilerParams(
            dimension_semantics=("parallel",)),
    )(*operands)
    return out[:M, :n_out]


# ----------------------------------------------------------------------------
# Glue: im2col patches (bf16), per-layer constant pool matrices
# ----------------------------------------------------------------------------
def _extract_patches(x, k, stride, pad):
    """x:(B,H,W,C) -> (B*Ho*Wo, k*k*C) patches, taps in (di, dj, c) order."""
    B, H, W, C = x.shape
    xp = jnp.pad(x, ((0, 0), (pad, pad), (pad, pad), (0, 0)))
    Ho = (H + 2 * pad - k) // stride + 1
    Wo = (W + 2 * pad - k) // stride + 1
    taps = []
    for di in range(k):
        for dj in range(k):
            taps.append(xp[:, di:di + stride * Ho:stride,
                           dj:dj + stride * Wo:stride, :])
    p = jnp.stack(taps, axis=3)                        # (B,Ho,Wo,k*k,C)
    return p.reshape(B * Ho * Wo, k * k * C), (B, Ho, Wo)


def _conv_pool_matrix(c, np_cols, m_rows):
    """diag(1/M) over the first c real columns (host-built constant)."""
    p = np.zeros((np_cols, np_cols), np.float32)
    p[np.arange(c), np.arange(c)] = 1.0 / m_rows
    return jnp.asarray(p)


def _deconv_pool_matrix(cout, np_cols, m_rows):
    """Same-channel/(4M) grouping over the 4 sub-pixel phase columns."""
    n_real = 4 * cout
    ch = np.arange(n_real) % cout
    blk = (ch[:, None] == ch[None, :]).astype(np.float32) / (4.0 * m_rows)
    p = np.zeros((np_cols, np_cols), np.float32)
    p[:n_real, :n_real] = blk
    return jnp.asarray(p)


# ----------------------------------------------------------------------------
# Layers
# ----------------------------------------------------------------------------
def conv_layer(x, wp, n_out, bn_cols=None, out_dtype=jnp.bfloat16):
    """Conv2d(k=3, s=2, p=1) [+ fused BN + ReLU] via im2col + fused matmul."""
    patches, (B, Ho, Wo) = _extract_patches(x, 3, 2, 1)       # bf16 patches
    M = B * Ho * Wo
    Np = wp["w"].shape[1]
    if bn_cols is not None:
        y = fused_matmul(patches, wp["w"], n_out=n_out, bn_cols=bn_cols,
                         pool=_conv_pool_matrix(n_out, Np, M),
                         out_dtype=out_dtype)
    else:
        y = fused_matmul(patches, wp["w"], n_out=n_out, bias=wp["b"],
                         out_dtype=out_dtype)
    return y.reshape(B, Ho, Wo, n_out)


def deconv_layer(x, wp, cout, bn_cols=None, final_sigmoid=False,
                 out_dtype=jnp.bfloat16):
    """ConvTranspose2d(k=4, s=2, p=1) via sub-pixel (4-phase) decomposition:
    one stride-1 3x3 conv over the original map with a (9*Cin, 4*Cout) weight,
    BN/sigmoid fused into the matmul epilogue, then phase interleave."""
    B, H, W, _ = x.shape
    # TODO(synk): replace the stride-1 im2col (9x patch blowup) with in-kernel
    # tap accumulation over shifted windows once batch/spatial grow.
    patches, _ = _extract_patches(x, 3, 1, 1)
    M = B * H * W
    Np = wp["w"].shape[1]
    if bn_cols is not None:
        y = fused_matmul(patches, wp["w"], n_out=4 * cout, bn_cols=bn_cols,
                         pool=_deconv_pool_matrix(cout, Np, M),
                         out_dtype=out_dtype)
    else:
        y = fused_matmul(patches, wp["w"], n_out=4 * cout, bias=wp["b"],
                         activation="sigmoid" if final_sigmoid else "none",
                         out_dtype=out_dtype)
    # columns are (phase_a, phase_b, cout) -> interleave to (2H, 2W)
    y = y.reshape(B, H, W, 2, 2, cout)
    y = jnp.transpose(y, (0, 1, 3, 2, 4, 5)).reshape(B, 2 * H, 2 * W, cout)
    return y


# ----------------------------------------------------------------------------
# VAE forward
# ----------------------------------------------------------------------------
def vae_forward(packed, x_nchw, eps_key, *, channel_num, kernel_num,
                feature_size, z_size):
    kn4, kn2 = kernel_num // 4, kernel_num // 2
    feature_volume = kernel_num * feature_size * feature_size

    x = jnp.transpose(x_nchw, (0, 2, 3, 1)).astype(jnp.bfloat16)   # NHWC bf16
    B = x.shape[0]

    # --- encoder: conv(s2)+BN+ReLU, conv(s2)+BN+ReLU, conv(s2) ---
    h = conv_layer(x, packed["c1"], kn4, bn_cols=packed["bn1"])
    h = conv_layer(h, packed["c2"], kn2, bn_cols=packed["bn2"])
    h = conv_layer(h, packed["c3"], kernel_num, out_dtype=jnp.float32)

    # --- q_full_cov: flatten (PyTorch NCHW .view) + fused 3-head XLA matmul ---
    # (launch cost >> compute at M=2, K=128, N=14 -> XLA per perf review)
    unrolled = jnp.transpose(h, (0, 3, 1, 2)).reshape(B, feature_volume)
    qall = unrolled @ packed["q_w"] + packed["q_b"]
    mean = qall[:, :z_size]
    logvar = qall[:, z_size:2 * z_size]
    logcorr = qall[:, 2 * z_size:]

    # --- lower_tri_cov (matches torch: diag = softplus(exp(0.5*logvar))) ---
    std = jnp.exp(0.5 * logvar)
    corr = jnp.tanh(logcorr)
    dim = z_size
    li, lj = jnp.tril_indices(dim, k=-1)
    L = jnp.zeros((B, dim, dim), jnp.float32)
    L = L.at[:, li, lj].set(corr)
    L = L.at[:, jnp.arange(dim), jnp.arange(dim)].set(jax.nn.softplus(std))
    cov = L @ jnp.swapaxes(L, 1, 2)

    # --- z_s: z = mean + cholesky(cov) @ eps ---
    # TODO(synk): torch's try/except close_psd (eigh clamp) fallback has no
    # in-graph equivalent; cov = L L^T with positive diagonal is PSD by
    # construction so the primary Cholesky path is always taken.
    eps = jax.random.normal(eps_key, (B, dim, 1), jnp.float32)
    chol = jnp.linalg.cholesky(cov)
    z = mean + (chol @ eps)[..., 0]

    # --- project (XLA micro-matmul) + decoder ---
    zp = z @ packed["pr_w"] + packed["pr_b"]
    feat = zp.reshape(B, kernel_num, feature_size, feature_size)   # NCHW view
    feat = jnp.transpose(feat, (0, 2, 3, 1)).astype(jnp.bfloat16)  # NHWC bf16
    d = deconv_layer(feat, packed["d1"], kn2, bn_cols=packed["dbn1"])
    d = deconv_layer(d, packed["d2"], kn4, bn_cols=packed["dbn2"])
    d = deconv_layer(d, packed["d3"], channel_num, final_sigmoid=True,
                     out_dtype=jnp.float32)
    x_rec = jnp.transpose(d, (0, 3, 1, 2))                         # NHWC->NCHW

    return (mean, L, cov), x_rec


# ----------------------------------------------------------------------------
# One-time weight packing (outside jit): layout, N padding, bf16 cast
# ----------------------------------------------------------------------------
def _pack_weight(w_mat):
    """(K,N) f32 -> (Kp,Np) bf16 with Kp,Np multiples of 128."""
    K, N = w_mat.shape
    Kp, Np = _round_up(K, 128), _round_up(N, 128)
    w_p = jnp.zeros((Kp, Np), jnp.float32).at[:K, :N].set(w_mat)
    return w_p.astype(jnp.bfloat16)


def _pack_bias_row(v, np_cols):
    return jnp.zeros((1, np_cols), jnp.float32).at[0, :v.shape[0]].set(
        v.astype(jnp.float32))


def _pack_bn_cols(gamma, beta, np_cols, phases=1):
    g = jnp.tile(gamma, phases)
    b = jnp.tile(beta, phases)
    return (_pack_bias_row(g, np_cols), _pack_bias_row(b, np_cols))


def _pack_conv(w, b):
    """w:(outC,inC,3,3) PyTorch Conv2d layout -> im2col matmul weight."""
    outC, inC, k, _ = w.shape
    w_mat = jnp.transpose(w, (2, 3, 1, 0)).reshape(k * k * inC, outC)
    wp = _pack_weight(w_mat)
    return {"w": wp, "b": _pack_bias_row(b, wp.shape[1])}


def _pack_deconv(w, b):
    """w:(inC,outC,4,4) ConvTranspose2d layout -> sub-pixel (stride-2) weight.

    Output phase (a,b) at input offset (di,dj) in {0,1,2}^2 uses original tap
    W[:, :, a+3-2*di, b+3-2*dj] (zero when out of range).  Columns ordered
    (a, b, outC); bias is tiled over the 4 phases."""
    inC, outC = int(w.shape[0]), int(w.shape[1])
    wn = np.asarray(w, np.float32)
    wm = np.zeros((3, 3, inC, 2, 2, outC), np.float32)
    for di in range(3):
        for dj in range(3):
            for a in range(2):
                for bb in range(2):
                    ky = a + 3 - 2 * di
                    kx = bb + 3 - 2 * dj
                    if 0 <= ky <= 3 and 0 <= kx <= 3:
                        wm[di, dj, :, a, bb, :] = wn[:, :, ky, kx]
    w_mat = jnp.asarray(wm.reshape(9 * inC, 4 * outC))
    wp = _pack_weight(w_mat)
    return {"w": wp, "b": _pack_bias_row(jnp.tile(b, 4), wp.shape[1])}


def pack_params(p):
    packed = {
        "c1": _pack_conv(p["c1_w"], p["c1_b"]),
        "c2": _pack_conv(p["c2_w"], p["c2_b"]),
        "c3": _pack_conv(p["c3_w"], p["c3_b"]),
        "d1": _pack_deconv(p["d1_w"], p["d1_b"]),
        "d2": _pack_deconv(p["d2_w"], p["d2_b"]),
        "d3": _pack_deconv(p["d3_w"], p["d3_b"]),
        # fused q heads (mean | logvar | logcorr) and the z projection stay as
        # raw f32 XLA matmuls (tiny).
        "q_w": jnp.concatenate([p["qm_w"], p["qv_w"], p["qc_w"]], axis=1),
        "q_b": jnp.concatenate([p["qm_b"], p["qv_b"], p["qc_b"]]),
        "pr_w": p["pr_w"], "pr_b": p["pr_b"],
    }
    packed["bn1"] = _pack_bn_cols(p["bn1_g"], p["bn1_b"],
                                  packed["c1"]["w"].shape[1])
    packed["bn2"] = _pack_bn_cols(p["bn2_g"], p["bn2_b"],
                                  packed["c2"]["w"].shape[1])
    packed["dbn1"] = _pack_bn_cols(p["dbn1_g"], p["dbn1_b"],
                                   packed["d1"]["w"].shape[1], phases=4)
    packed["dbn2"] = _pack_bn_cols(p["dbn2_g"], p["dbn2_b"],
                                   packed["d2"]["w"].shape[1], phases=4)
    return packed


# ----------------------------------------------------------------------------
# Deterministic parameter construction (PyTorch layouts)
# ----------------------------------------------------------------------------
def init_params(key, channel_num, kernel_num, z_size, feature_volume, corr_size):
    kn4, kn2 = kernel_num // 4, kernel_num // 2
    keys = jax.random.split(key, 16)
    nrm = lambda k, shape, s=0.05: (s * jax.random.normal(k, shape)).astype(jnp.float32)
    z32 = lambda shape: jnp.zeros(shape, jnp.float32)
    o32 = lambda shape: jnp.ones(shape, jnp.float32)
    return {
        "c1_w": nrm(keys[0], (kn4, channel_num, 3, 3)), "c1_b": z32((kn4,)),
        "bn1_g": o32((kn4,)), "bn1_b": z32((kn4,)),
        "c2_w": nrm(keys[1], (kn2, kn4, 3, 3)), "c2_b": z32((kn2,)),
        "bn2_g": o32((kn2,)), "bn2_b": z32((kn2,)),
        "c3_w": nrm(keys[2], (kernel_num, kn2, 3, 3)), "c3_b": z32((kernel_num,)),
        "qm_w": nrm(keys[3], (feature_volume, z_size)), "qm_b": z32((z_size,)),
        "qv_w": nrm(keys[4], (feature_volume, z_size)), "qv_b": z32((z_size,)),
        "qc_w": nrm(keys[5], (feature_volume, corr_size)), "qc_b": z32((corr_size,)),
        "pr_w": nrm(keys[6], (z_size, feature_volume)), "pr_b": z32((feature_volume,)),
        "d1_w": nrm(keys[7], (kernel_num, kn2, 4, 4)), "d1_b": z32((kn2,)),
        "dbn1_g": o32((kn2,)), "dbn1_b": z32((kn2,)),
        "d2_w": nrm(keys[8], (kn2, kn4, 4, 4)), "d2_b": z32((kn4,)),
        "dbn2_g": o32((kn4,)), "dbn2_b": z32((kn4,)),
        "d3_w": nrm(keys[9], (kn4, channel_num, 4, 4)), "d3_b": z32((channel_num,)),
    }


# ----------------------------------------------------------------------------
# Main
# ----------------------------------------------------------------------------
if __name__ == "__main__":
    batch = 2
    image_size = 16
    channel_num = 3
    kernel_num = 32
    z_size = 4
    feature_size = image_size // 8
    feature_volume = kernel_num * feature_size ** 2
    corr_size = z_size * (z_size - 1) // 2

    root = jax.random.PRNGKey(0)
    k_param, k_x, k_eps = jax.random.split(root, 3)

    params = init_params(k_param, channel_num, kernel_num, z_size,
                         feature_volume, corr_size)
    packed = pack_params(params)        # one-time weight pre-packing (not jit'd)
    x = jax.random.normal(k_x, (batch, channel_num, image_size, image_size),
                          dtype=jnp.float32)

    fwd = jax.jit(functools.partial(vae_forward,
                                    channel_num=channel_num,
                                    kernel_num=kernel_num,
                                    feature_size=feature_size,
                                    z_size=z_size))
    (mean, L, cov), x_rec = fwd(packed, x, k_eps)
    jax.block_until_ready((mean, L, cov, x_rec))

    assert mean.shape == (batch, z_size)
    assert L.shape == (batch, z_size, z_size)
    assert cov.shape == (batch, z_size, z_size)
    assert x_rec.shape == (batch, channel_num, image_size, image_size)
    assert bool(jnp.all(jnp.isfinite(mean)))
    assert bool(jnp.all(jnp.isfinite(x_rec)))
    assert bool(jnp.all((x_rec >= 0.0) & (x_rec <= 1.0)))   # sigmoid output
    print("KERNEL_OK")
</pallas_src>

<mosaic_0001>
module attributes {stable_mosaic.version = 11 : i64} {
  func.func private @main(%arg0: i32) attributes {dimension_semantics = [#tpu.dimension_semantics<core_parallel>], iteration_bounds = array<i64: 2>, tpu.core_type = #tpu.core_type<sc_scalar_subcore>, window_params = []} {
    return
  }
}

module attributes {stable_mosaic.version = 11 : i64} {
  func.func private @main(%arg0: i32) attributes {dimension_semantics = [#tpu.dimension_semantics<core_parallel>], iteration_bounds = array<i64: 2>, tpu.core_type = #tpu.core_type<sc_scalar_subcore>, window_params = []} {
    return
  }
}

module attributes {stable_mosaic.version = 11 : i64} {
  func.func @_fused_matmul_kernel(%arg0: i32, %arg1: memref<128x128xbf16, #tpu.memory_space<vmem>>, %arg2: memref<128x128xbf16, #tpu.memory_space<vmem>>, %arg3: memref<1x128xf32, #tpu.memory_space<vmem>>, %arg4: memref<1x128xf32, #tpu.memory_space<vmem>>, %arg5: memref<128x128xf32, #tpu.memory_space<vmem>>, %arg6: memref<128x128xbf16, #tpu.memory_space<vmem>>) attributes {dimension_semantics = [#tpu.dimension_semantics<parallel>], iteration_bounds = array<i64: 1>, scalar_prefetch = 0 : i64, scratch_operands = 0 : i64, tpu.core_type = #tpu.core_type<tc>, window_params = [{pipeline_mode = #tpu.pipeline_mode<synchronous>, transform_indices = @transform_0, window_bounds = array<i64: 128, 128>}, {transform_indices = @transform_1, window_bounds = array<i64: 128, 128>}, {transform_indices = @transform_2, window_bounds = array<i64: 1, 128>}, {transform_indices = @transform_3, window_bounds = array<i64: 1, 128>}, {transform_indices = @transform_4, window_bounds = array<i64: 128, 128>}, {transform_indices = @transform_5, window_bounds = array<i64: 128, 128>}]} {
    %c0 = arith.constant 0 : index
    %c0_0 = arith.constant 0 : index
    %0 = vector.load %arg1[%c0, %c0_0] : memref<128x128xbf16, #tpu.memory_space<vmem>>, vector<128x128xbf16>
    %c0_1 = arith.constant 0 : index
    %c0_2 = arith.constant 0 : index
    %1 = vector.load %arg2[%c0_1, %c0_2] : memref<128x128xbf16, #tpu.memory_space<vmem>>, vector<128x128xbf16>
    %cst = arith.constant dense<0.000000e+00> : vector<128x128xf32>
    %2 = tpu.matmul %0, %1, %cst {dimension_numbers = #tpu.dot_dimension_numbers<[1], [0], [0], [1], [0, 0, 1, 1], [], []>} : vector<128x128xbf16>, vector<128x128xbf16>, vector<128x128xf32> -> vector<128x128xf32>
    %cst_3 = arith.constant dense<0.000000e+00> : vector<128xf32>
    %3 = vector.multi_reduction <add>, %2, %cst_3 [0] : vector<128x128xf32> to vector<128xf32>
    %4 = vector.shape_cast %3 : vector<128xf32> to vector<1x128xf32>
    %5 = arith.mulf %2, %2 : vector<128x128xf32>
    %cst_4 = arith.constant dense<0.000000e+00> : vector<128xf32>
    %6 = vector.multi_reduction <add>, %5, %cst_4 [0] : vector<128x128xf32> to vector<128xf32>
    %7 = vector.shape_cast %6 : vector<128xf32> to vector<1x128xf32>
    %c0_5 = arith.constant 0 : index
    %c0_6 = arith.constant 0 : index
    %8 = vector.load %arg5[%c0_5, %c0_6] : memref<128x128xf32, #tpu.memory_space<vmem>>, vector<128x128xf32>
    %cst_7 = arith.constant dense<0.000000e+00> : vector<1x128xf32>
    %9 = tpu.matmul %4, %8, %cst_7 {dimension_numbers = #tpu.dot_dimension_numbers<[1], [0], [0], [1], [0, 0, 1, 1], [], []>} : vector<1x128xf32>, vector<128x128xf32>, vector<1x128xf32> -> vector<1x128xf32>
    %c0_8 = arith.constant 0 : index
    %c0_9 = arith.constant 0 : index
    %10 = vector.load %arg5[%c0_8, %c0_9] : memref<128x128xf32, #tpu.memory_space<vmem>>, vector<128x128xf32>
    %cst_10 = arith.constant dense<0.000000e+00> : vector<1x128xf32>
    %11 = tpu.matmul %7, %10, %cst_10 {dimension_numbers = #tpu.dot_dimension_numbers<[1], [0], [0], [1], [0, 0, 1, 1], [], []>} : vector<1x128xf32>, vector<128x128xf32>, vector<1x128xf32> -> vector<1x128xf32>
    %12 = arith.mulf %9, %9 : vector<1x128xf32>
    %13 = arith.subf %11, %12 : vector<1x128xf32>
    %c0_11 = arith.constant 0 : index
    %c0_12 = arith.constant 0 : index
    %14 = vector.load %arg3[%c0_11, %c0_12] : memref<1x128xf32, #tpu.memory_space<vmem>>, vector<1x128xf32>
    %cst_13 = arith.constant 9.99999974E-6 : f32
    %15 = vector.broadcast %cst_13 : f32 to vector<1x128xf32>
    %16 = arith.addf %13, %15 : vector<1x128xf32>
    %17 = math.rsqrt %16 : vector<1x128xf32>
    %18 = arith.mulf %14, %17 : vector<1x128xf32>
    %19 = vector.broadcast %9 : vector<1x128xf32> to vector<128x128xf32>
    %20 = arith.subf %2, %19 : vector<128x128xf32>
    %21 = vector.broadcast %18 : vector<1x128xf32> to vector<128x128xf32>
    %22 = arith.mulf %20, %21 : vector<128x128xf32>
    %c0_14 = arith.constant 0 : index
    %c0_15 = arith.constant 0 : index
    %23 = vector.load %arg4[%c0_14, %c0_15] : memref<1x128xf32, #tpu.memory_space<vmem>>, vector<1x128xf32>
    %24 = vector.broadcast %23 : vector<1x128xf32> to vector<128x128xf32>
    %25 = arith.addf %22, %24 : vector<128x128xf32>
    %cst_16 = arith.constant 0.000000e+00 : f32
    %26 = vector.broadcast %cst_16 : f32 to vector<128x128xf32>
    %27 = arith.maximumf %25, %26 : vector<128x128xf32>
    %28 = arith.truncf %27 : vector<128x128xf32> to vector<128x128xbf16>
    %c0_17 = arith.constant 0 : index
    %c0_18 = arith.constant 0 : index
    %29 = vector.load %arg6[%c0_17, %c0_18] : memref<128x128xbf16, #tpu.memory_space<vmem>>, vector<128x128xbf16>
    tpu.vector_store %arg6[%c0_17, %c0_18], %28 {strides = array<i32>} : memref<128x128xbf16, #tpu.memory_space<vmem>>, vector<128x128xbf16>,
    return
  }
  func.func @transform_0(%arg0: i32) -> (i32, i32) {
    %c0_i32 = arith.constant 0 : i32
    %c0_i32_0 = arith.constant 0 : i32
    %c0_i32_1 = arith.constant 0 : i32
    return %c0_i32, %c0_i32_0 : i32, i32
  }
  func.func @transform_1(%arg0: i32) -> (i32, i32) {
    %c0_i32 = arith.constant 0 : i32
    %c0_i32_0 = arith.constant 0 : i32
    return %c0_i32, %arg0 : i32, i32
  }
  func.func @transform_2(%arg0: i32) -> (i32, i32) {
    %c0_i32 = arith.constant 0 : i32
    %c0_i32_0 = arith.constant 0 : i32
    return %c0_i32, %arg0 : i32, i32
  }
  func.func @transform_3(%arg0: i32) -> (i32, i32) {
    %c0_i32 = arith.constant 0 : i32
    %c0_i32_0 = arith.constant 0 : i32
    return %c0_i32, %arg0 : i32, i32
  }
  func.func @transform_4(%arg0: i32) -> (i32, i32) {
    %c0_i32 = arith.constant 0 : i32
    return %arg0, %arg0 : i32, i32
  }
  func.func @transform_5(%arg0: i32) -> (i32, i32) {
    %c0_i32 = arith.constant 0 : i32
    %c0_i32_0 = arith.constant 0 : i32
    return %c0_i32, %arg0 : i32, i32
  }
}

module attributes {stable_mosaic.version = 11 : i64} {
  func.func @_fused_matmul_kernel(%arg0: i32, %arg1: memref<32x128xbf16, #tpu.memory_space<vmem>>, %arg2: memref<128x128xbf16, #tpu.memory_space<vmem>>, %arg3: memref<1x128xf32, #tpu.memory_space<vmem>>, %arg4: memref<1x128xf32, #tpu.memory_space<vmem>>, %arg5: memref<128x128xf32, #tpu.memory_space<vmem>>, %arg6: memref<32x128xbf16, #tpu.memory_space<vmem>>) attributes {dimension_semantics = [#tpu.dimension_semantics<parallel>], iteration_bounds = array<i64: 1>, scalar_prefetch = 0 : i64, scratch_operands = 0 : i64, tpu.core_type = #tpu.core_type<tc>, window_params = [{pipeline_mode = #tpu.pipeline_mode<synchronous>, transform_indices = @transform_0, window_bounds = array<i64: 32, 128>}, {transform_indices = @transform_1, window_bounds = array<i64: 128, 128>}, {transform_indices = @transform_2, window_bounds = array<i64: 1, 128>}, {transform_indices = @transform_3, window_bounds = array<i64: 1, 128>}, {transform_indices = @transform_4, window_bounds = array<i64: 128, 128>}, {transform_indices = @transform_5, window_bounds = array<i64: 32, 128>}]} {
    %c0 = arith.constant 0 : index
    %c0_0 = arith.constant 0 : index
    %0 = vector.load %arg1[%c0, %c0_0] : memref<32x128xbf16, #tpu.memory_space<vmem>>, vector<32x128xbf16>
    %c0_1 = arith.constant 0 : index
    %c0_2 = arith.constant 0 : index
    %1 = vector.load %arg2[%c0_1, %c0_2] : memref<128x128xbf16, #tpu.memory_space<vmem>>, vector<128x128xbf16>
    %cst = arith.constant dense<0.000000e+00> : vector<32x128xf32>
    %2 = tpu.matmul %0, %1, %cst {dimension_numbers = #tpu.dot_dimension_numbers<[1], [0], [0], [1], [0, 0, 1, 1], [], []>} : vector<32x128xbf16>, vector<128x128xbf16>, vector<32x128xf32> -> vector<32x128xf32>
    %cst_3 = arith.constant dense<0.000000e+00> : vector<128xf32>
    %3 = vector.multi_reduction <add>, %2, %cst_3 [0] : vector<32x128xf32> to vector<128xf32>
    %4 = vector.shape_cast %3 : vector<128xf32> to vector<1x128xf32>
    %5 = arith.mulf %2, %2 : vector<32x128xf32>
    %cst_4 = arith.constant dense<0.000000e+00> : vector<128xf32>
    %6 = vector.multi_reduction <add>, %5, %cst_4 [0] : vector<32x128xf32> to vector<128xf32>
    %7 = vector.shape_cast %6 : vector<128xf32> to vector<1x128xf32>
    %c0_5 = arith.constant 0 : index
    %c0_6 = arith.constant 0 : index
    %8 = vector.load %arg5[%c0_5, %c0_6] : memref<128x128xf32, #tpu.memory_space<vmem>>, vector<128x128xf32>
    %cst_7 = arith.constant dense<0.000000e+00> : vector<1x128xf32>
    %9 = tpu.matmul %4, %8, %cst_7 {dimension_numbers = #tpu.dot_dimension_numbers<[1], [0], [0], [1], [0, 0, 1, 1], [], []>} : vector<1x128xf32>, vector<128x128xf32>, vector<1x128xf32> -> vector<1x128xf32>
    %c0_8 = arith.constant 0 : index
    %c0_9 = arith.constant 0 : index
    %10 = vector.load %arg5[%c0_8, %c0_9] : memref<128x128xf32, #tpu.memory_space<vmem>>, vector<128x128xf32>
    %cst_10 = arith.constant dense<0.000000e+00> : vector<1x128xf32>
    %11 = tpu.matmul %7, %10, %cst_10 {dimension_numbers = #tpu.dot_dimension_numbers<[1], [0], [0], [1], [0, 0, 1, 1], [], []>} : vector<1x128xf32>, vector<128x128xf32>, vector<1x128xf32> -> vector<1x128xf32>
    %12 = arith.mulf %9, %9 : vector<1x128xf32>
    %13 = arith.subf %11, %12 : vector<1x128xf32>
    %c0_11 = arith.constant 0 : index
    %c0_12 = arith.constant 0 : index
    %14 = vector.load %arg3[%c0_11, %c0_12] : memref<1x128xf32, #tpu.memory_space<vmem>>, vector<1x128xf32>
    %cst_13 = arith.constant 9.99999974E-6 : f32
    %15 = vector.broadcast %cst_13 : f32 to vector<1x128xf32>
    %16 = arith.addf %13, %15 : vector<1x128xf32>
    %17 = math.rsqrt %16 : vector<1x128xf32>
    %18 = arith.mulf %14, %17 : vector<1x128xf32>
    %19 = vector.broadcast %9 : vector<1x128xf32> to vector<32x128xf32>
    %20 = arith.subf %2, %19 : vector<32x128xf32>
    %21 = vector.broadcast %18 : vector<1x128xf32> to vector<32x128xf32>
    %22 = arith.mulf %20, %21 : vector<32x128xf32>
    %c0_14 = arith.constant 0 : index
    %c0_15 = arith.constant 0 : index
    %23 = vector.load %arg4[%c0_14, %c0_15] : memref<1x128xf32, #tpu.memory_space<vmem>>, vector<1x128xf32>
    %24 = vector.broadcast %23 : vector<1x128xf32> to vector<32x128xf32>
    %25 = arith.addf %22, %24 : vector<32x128xf32>
    %cst_16 = arith.constant 0.000000e+00 : f32
    %26 = vector.broadcast %cst_16 : f32 to vector<32x128xf32>
    %27 = arith.maximumf %25, %26 : vector<32x128xf32>
    %28 = arith.truncf %27 : vector<32x128xf32> to vector<32x128xbf16>
    %c0_17 = arith.constant 0 : index
    %c0_18 = arith.constant 0 : index
    %29 = vector.load %arg6[%c0_17, %c0_18] : memref<32x128xbf16, #tpu.memory_space<vmem>>, vector<32x128xbf16>
    tpu.vector_store %arg6[%c0_17, %c0_18], %28 {strides = array<i32>} : memref<32x128xbf16, #tpu.memory_space<vmem>>, vector<32x128xbf16>,
    return
  }
  func.func @transform_0(%arg0: i32) -> (i32, i32) {
    %c0_i32 = arith.constant 0 : i32
    %c0_i32_0 = arith.constant 0 : i32
    %c0_i32_1 = arith.constant 0 : i32
    return %c0_i32, %c0_i32_0 : i32, i32
  }
  func.func @transform_1(%arg0: i32) -> (i32, i32) {
    %c0_i32 = arith.constant 0 : i32
    %c0_i32_0 = arith.constant 0 : i32
    return %c0_i32, %arg0 : i32, i32
  }
  func.func @transform_2(%arg0: i32) -> (i32, i32) {
    %c0_i32 = arith.constant 0 : i32
    %c0_i32_0 = arith.constant 0 : i32
    return %c0_i32, %arg0 : i32, i32
  }
  func.func @transform_3(%arg0: i32) -> (i32, i32) {
    %c0_i32 = arith.constant 0 : i32
    %c0_i32_0 = arith.constant 0 : i32
    return %c0_i32, %arg0 : i32, i32
  }
  func.func @transform_4(%arg0: i32) -> (i32, i32) {
    %c0_i32 = arith.constant 0 : i32
    return %arg0, %arg0 : i32, i32
  }
  func.func @transform_5(%arg0: i32) -> (i32, i32) {
    %c0_i32 = arith.constant 0 : i32
    %c0_i32_0 = arith.constant 0 : i32
    return %c0_i32, %arg0 : i32, i32
  }
}

module attributes {stable_mosaic.version = 11 : i64} {
  func.func @_fused_matmul_kernel(%arg0: i32, %arg1: memref<8x256xbf16, #tpu.memory_space<vmem>>, %arg2: memref<256x128xbf16, #tpu.memory_space<vmem>>, %arg3: memref<1x128xf32, #tpu.memory_space<vmem>>, %arg4: memref<8x128xf32, #tpu.memory_space<vmem>>) attributes {dimension_semantics = [#tpu.dimension_semantics<parallel>], iteration_bounds = array<i64: 1>, scalar_prefetch = 0 : i64, scratch_operands = 0 : i64, tpu.core_type = #tpu.core_type<tc>, window_params = [{pipeline_mode = #tpu.pipeline_mode<synchronous>, transform_indices = @transform_0, window_bounds = array<i64: 8, 256>}, {transform_indices = @transform_1, window_bounds = array<i64: 256, 128>}, {transform_indices = @transform_2, window_bounds = array<i64: 1, 128>}, {transform_indices = @transform_3, window_bounds = array<i64: 8, 128>}]} {
    %c0 = arith.constant 0 : index
    %c0_0 = arith.constant 0 : index
    %0 = vector.load %arg1[%c0, %c0_0] : memref<8x256xbf16, #tpu.memory_space<vmem>>, vector<8x256xbf16>
    %c0_1 = arith.constant 0 : index
    %c0_2 = arith.constant 0 : index
    %1 = vector.load %arg2[%c0_1, %c0_2] : memref<256x128xbf16, #tpu.memory_space<vmem>>, vector<256x128xbf16>
    %cst = arith.constant dense<0.000000e+00> : vector<8x128xf32>
    %2 = tpu.matmul %0, %1, %cst {dimension_numbers = #tpu.dot_dimension_numbers<[1], [0], [0], [1], [0, 0, 1, 1], [], []>} : vector<8x256xbf16>, vector<256x128xbf16>, vector<8x128xf32> -> vector<8x128xf32>
    %c0_3 = arith.constant 0 : index
    %c0_4 = arith.constant 0 : index
    %3 = vector.load %arg3[%c0_3, %c0_4] : memref<1x128xf32, #tpu.memory_space<vmem>>, vector<1x128xf32>
    %4 = vector.broadcast %3 : vector<1x128xf32> to vector<8x128xf32>
    %5 = arith.addf %2, %4 : vector<8x128xf32>
    %c0_5 = arith.constant 0 : index
    %c0_6 = arith.constant 0 : index
    %6 = vector.load %arg4[%c0_5, %c0_6] : memref<8x128xf32, #tpu.memory_space<vmem>>, vector<8x128xf32>
    tpu.vector_store %arg4[%c0_5, %c0_6], %5 {strides = array<i32>} : memref<8x128xf32, #tpu.memory_space<vmem>>, vector<8x128xf32>,
    return
  }
  func.func @transform_0(%arg0: i32) -> (i32, i32) {
    %c0_i32 = arith.constant 0 : i32
    %c0_i32_0 = arith.constant 0 : i32
    %c0_i32_1 = arith.constant 0 : i32
    return %c0_i32, %c0_i32_0 : i32, i32
  }
  func.func @transform_1(%arg0: i32) -> (i32, i32) {
    %c0_i32 = arith.constant 0 : i32
    %c0_i32_0 = arith.constant 0 : i32
    return %c0_i32, %arg0 : i32, i32
  }
  func.func @transform_2(%arg0: i32) -> (i32, i32) {
    %c0_i32 = arith.constant 0 : i32
    %c0_i32_0 = arith.constant 0 : i32
    return %c0_i32, %arg0 : i32, i32
  }
  func.func @transform_3(%arg0: i32) -> (i32, i32) {
    %c0_i32 = arith.constant 0 : i32
    %c0_i32_0 = arith.constant 0 : i32
    return %c0_i32, %arg0 : i32, i32
  }
}

module attributes {stable_mosaic.version = 11 : i64} {
  func.func @_fused_matmul_kernel(%arg0: i32, %arg1: memref<8x384xbf16, #tpu.memory_space<vmem>>, %arg2: memref<384x128xbf16, #tpu.memory_space<vmem>>, %arg3: memref<1x128xf32, #tpu.memory_space<vmem>>, %arg4: memref<1x128xf32, #tpu.memory_space<vmem>>, %arg5: memref<128x128xf32, #tpu.memory_space<vmem>>, %arg6: memref<8x128xbf16, #tpu.memory_space<vmem>>) attributes {dimension_semantics = [#tpu.dimension_semantics<parallel>], iteration_bounds = array<i64: 1>, scalar_prefetch = 0 : i64, scratch_operands = 0 : i64, tpu.core_type = #tpu.core_type<tc>, window_params = [{pipeline_mode = #tpu.pipeline_mode<synchronous>, transform_indices = @transform_0, window_bounds = array<i64: 8, 384>}, {transform_indices = @transform_1, window_bounds = array<i64: 384, 128>}, {transform_indices = @transform_2, window_bounds = array<i64: 1, 128>}, {transform_indices = @transform_3, window_bounds = array<i64: 1, 128>}, {transform_indices = @transform_4, window_bounds = array<i64: 128, 128>}, {transform_indices = @transform_5, window_bounds = array<i64: 8, 128>}]} {
    %c0 = arith.constant 0 : index
    %c0_0 = arith.constant 0 : index
    %0 = vector.load %arg1[%c0, %c0_0] : memref<8x384xbf16, #tpu.memory_space<vmem>>, vector<8x384xbf16>
    %c0_1 = arith.constant 0 : index
    %c0_2 = arith.constant 0 : index
    %1 = vector.load %arg2[%c0_1, %c0_2] : memref<384x128xbf16, #tpu.memory_space<vmem>>, vector<384x128xbf16>
    %cst = arith.constant dense<0.000000e+00> : vector<8x128xf32>
    %2 = tpu.matmul %0, %1, %cst {dimension_numbers = #tpu.dot_dimension_numbers<[1], [0], [0], [1], [0, 0, 1, 1], [], []>} : vector<8x384xbf16>, vector<384x128xbf16>, vector<8x128xf32> -> vector<8x128xf32>
    %cst_3 = arith.constant dense<0.000000e+00> : vector<128xf32>
    %3 = vector.multi_reduction <add>, %2, %cst_3 [0] : vector<8x128xf32> to vector<128xf32>
    %4 = vector.shape_cast %3 : vector<128xf32> to vector<1x128xf32>
    %5 = arith.mulf %2, %2 : vector<8x128xf32>
    %cst_4 = arith.constant dense<0.000000e+00> : vector<128xf32>
    %6 = vector.multi_reduction <add>, %5, %cst_4 [0] : vector<8x128xf32> to vector<128xf32>
    %7 = vector.shape_cast %6 : vector<128xf32> to vector<1x128xf32>
    %c0_5 = arith.constant 0 : index
    %c0_6 = arith.constant 0 : index
    %8 = vector.load %arg5[%c0_5, %c0_6] : memref<128x128xf32, #tpu.memory_space<vmem>>, vector<128x128xf32>
    %cst_7 = arith.constant dense<0.000000e+00> : vector<1x128xf32>
    %9 = tpu.matmul %4, %8, %cst_7 {dimension_numbers = #tpu.dot_dimension_numbers<[1], [0], [0], [1], [0, 0, 1, 1], [], []>} : vector<1x128xf32>, vector<128x128xf32>, vector<1x128xf32> -> vector<1x128xf32>
    %c0_8 = arith.constant 0 : index
    %c0_9 = arith.constant 0 : index
    %10 = vector.load %arg5[%c0_8, %c0_9] : memref<128x128xf32, #tpu.memory_space<vmem>>, vector<128x128xf32>
    %cst_10 = arith.constant dense<0.000000e+00> : vector<1x128xf32>
    %11 = tpu.matmul %7, %10, %cst_10 {dimension_numbers = #tpu.dot_dimension_numbers<[1], [0], [0], [1], [0, 0, 1, 1], [], []>} : vector<1x128xf32>, vector<128x128xf32>, vector<1x128xf32> -> vector<1x128xf32>
    %12 = arith.mulf %9, %9 : vector<1x128xf32>
    %13 = arith.subf %11, %12 : vector<1x128xf32>
    %c0_11 = arith.constant 0 : index
    %c0_12 = arith.constant 0 : index
    %14 = vector.load %arg3[%c0_11, %c0_12] : memref<1x128xf32, #tpu.memory_space<vmem>>, vector<1x128xf32>
    %cst_13 = arith.constant 9.99999974E-6 : f32
    %15 = vector.broadcast %cst_13 : f32 to vector<1x128xf32>
    %16 = arith.addf %13, %15 : vector<1x128xf32>
    %17 = math.rsqrt %16 : vector<1x128xf32>
    %18 = arith.mulf %14, %17 : vector<1x128xf32>
    %19 = vector.broadcast %9 : vector<1x128xf32> to vector<8x128xf32>
    %20 = arith.subf %2, %19 : vector<8x128xf32>
    %21 = vector.broadcast %18 : vector<1x128xf32> to vector<8x128xf32>
    %22 = arith.mulf %20, %21 : vector<8x128xf32>
    %c0_14 = arith.constant 0 : index
    %c0_15 = arith.constant 0 : index
    %23 = vector.load %arg4[%c0_14, %c0_15] : memref<1x128xf32, #tpu.memory_space<vmem>>, vector<1x128xf32>
    %24 = vector.broadcast %23 : vector<1x128xf32> to vector<8x128xf32>
    %25 = arith.addf %22, %24 : vector<8x128xf32>
    %cst_16 = arith.constant 0.000000e+00 : f32
    %26 = vector.broadcast %cst_16 : f32 to vector<8x128xf32>
    %27 = arith.maximumf %25, %26 : vector<8x128xf32>
    %28 = arith.truncf %27 : vector<8x128xf32> to vector<8x128xbf16>
    %c0_17 = arith.constant 0 : index
    %c0_18 = arith.constant 0 : index
    %29 = vector.load %arg6[%c0_17, %c0_18] : memref<8x128xbf16, #tpu.memory_space<vmem>>, vector<8x128xbf16>
    tpu.vector_store %arg6[%c0_17, %c0_18], %28 {strides = array<i32>} : memref<8x128xbf16, #tpu.memory_space<vmem>>, vector<8x128xbf16>,
    return
  }
  func.func @transform_0(%arg0: i32) -> (i32, i32) {
    %c0_i32 = arith.constant 0 : i32
    %c0_i32_0 = arith.constant 0 : i32
    %c0_i32_1 = arith.constant 0 : i32
    return %c0_i32, %c0_i32_0 : i32, i32
  }
  func.func @transform_1(%arg0: i32) -> (i32, i32) {
    %c0_i32 = arith.constant 0 : i32
    %c0_i32_0 = arith.constant 0 : i32
    return %c0_i32, %arg0 : i32, i32
  }
  func.func @transform_2(%arg0: i32) -> (i32, i32) {
    %c0_i32 = arith.constant 0 : i32
    %c0_i32_0 = arith.constant 0 : i32
    return %c0_i32, %arg0 : i32, i32
  }
  func.func @transform_3(%arg0: i32) -> (i32, i32) {
    %c0_i32 = arith.constant 0 : i32
    %c0_i32_0 = arith.constant 0 : i32
    return %c0_i32, %arg0 : i32, i32
  }
  func.func @transform_4(%arg0: i32) -> (i32, i32) {
    %c0_i32 = arith.constant 0 : i32
    return %arg0, %arg0 : i32, i32
  }
  func.func @transform_5(%arg0: i32) -> (i32, i32) {
    %c0_i32 = arith.constant 0 : i32
    %c0_i32_0 = arith.constant 0 : i32
    return %c0_i32, %arg0 : i32, i32
  }
}

module attributes {stable_mosaic.version = 11 : i64} {
  func.func @_fused_matmul_kernel(%arg0: i32, %arg1: memref<32x256xbf16, #tpu.memory_space<vmem>>, %arg2: memref<256x128xbf16, #tpu.memory_space<vmem>>, %arg3: memref<1x128xf32, #tpu.memory_space<vmem>>, %arg4: memref<1x128xf32, #tpu.memory_space<vmem>>, %arg5: memref<128x128xf32, #tpu.memory_space<vmem>>, %arg6: memref<32x128xbf16, #tpu.memory_space<vmem>>) attributes {dimension_semantics = [#tpu.dimension_semantics<parallel>], iteration_bounds = array<i64: 1>, scalar_prefetch = 0 : i64, scratch_operands = 0 : i64, tpu.core_type = #tpu.core_type<tc>, window_params = [{pipeline_mode = #tpu.pipeline_mode<synchronous>, transform_indices = @transform_0, window_bounds = array<i64: 32, 256>}, {transform_indices = @transform_1, window_bounds = array<i64: 256, 128>}, {transform_indices = @transform_2, window_bounds = array<i64: 1, 128>}, {transform_indices = @transform_3, window_bounds = array<i64: 1, 128>}, {transform_indices = @transform_4, window_bounds = array<i64: 128, 128>}, {transform_indices = @transform_5, window_bounds = array<i64: 32, 128>}]} {
    %c0 = arith.constant 0 : index
    %c0_0 = arith.constant 0 : index
    %0 = vector.load %arg1[%c0, %c0_0] : memref<32x256xbf16, #tpu.memory_space<vmem>>, vector<32x256xbf16>
    %c0_1 = arith.constant 0 : index
    %c0_2 = arith.constant 0 : index
    %1 = vector.load %arg2[%c0_1, %c0_2] : memref<256x128xbf16, #tpu.memory_space<vmem>>, vector<256x128xbf16>
    %cst = arith.constant dense<0.000000e+00> : vector<32x128xf32>
    %2 = tpu.matmul %0, %1, %cst {dimension_numbers = #tpu.dot_dimension_numbers<[1], [0], [0], [1], [0, 0, 1, 1], [], []>} : vector<32x256xbf16>, vector<256x128xbf16>, vector<32x128xf32> -> vector<32x128xf32>
    %cst_3 = arith.constant dense<0.000000e+00> : vector<128xf32>
    %3 = vector.multi_reduction <add>, %2, %cst_3 [0] : vector<32x128xf32> to vector<128xf32>
    %4 = vector.shape_cast %3 : vector<128xf32> to vector<1x128xf32>
    %5 = arith.mulf %2, %2 : vector<32x128xf32>
    %cst_4 = arith.constant dense<0.000000e+00> : vector<128xf32>
    %6 = vector.multi_reduction <add>, %5, %cst_4 [0] : vector<32x128xf32> to vector<128xf32>
    %7 = vector.shape_cast %6 : vector<128xf32> to vector<1x128xf32>
    %c0_5 = arith.constant 0 : index
    %c0_6 = arith.constant 0 : index
    %8 = vector.load %arg5[%c0_5, %c0_6] : memref<128x128xf32, #tpu.memory_space<vmem>>, vector<128x128xf32>
    %cst_7 = arith.constant dense<0.000000e+00> : vector<1x128xf32>
    %9 = tpu.matmul %4, %8, %cst_7 {dimension_numbers = #tpu.dot_dimension_numbers<[1], [0], [0], [1], [0, 0, 1, 1], [], []>} : vector<1x128xf32>, vector<128x128xf32>, vector<1x128xf32> -> vector<1x128xf32>
    %c0_8 = arith.constant 0 : index
    %c0_9 = arith.constant 0 : index
    %10 = vector.load %arg5[%c0_8, %c0_9] : memref<128x128xf32, #tpu.memory_space<vmem>>, vector<128x128xf32>
    %cst_10 = arith.constant dense<0.000000e+00> : vector<1x128xf32>
    %11 = tpu.matmul %7, %10, %cst_10 {dimension_numbers = #tpu.dot_dimension_numbers<[1], [0], [0], [1], [0, 0, 1, 1], [], []>} : vector<1x128xf32>, vector<128x128xf32>, vector<1x128xf32> -> vector<1x128xf32>
    %12 = arith.mulf %9, %9 : vector<1x128xf32>
    %13 = arith.subf %11, %12 : vector<1x128xf32>
    %c0_11 = arith.constant 0 : index
    %c0_12 = arith.constant 0 : index
    %14 = vector.load %arg3[%c0_11, %c0_12] : memref<1x128xf32, #tpu.memory_space<vmem>>, vector<1x128xf32>
    %cst_13 = arith.constant 9.99999974E-6 : f32
    %15 = vector.broadcast %cst_13 : f32 to vector<1x128xf32>
    %16 = arith.addf %13, %15 : vector<1x128xf32>
    %17 = math.rsqrt %16 : vector<1x128xf32>
    %18 = arith.mulf %14, %17 : vector<1x128xf32>
    %19 = vector.broadcast %9 : vector<1x128xf32> to vector<32x128xf32>
    %20 = arith.subf %2, %19 : vector<32x128xf32>
    %21 = vector.broadcast %18 : vector<1x128xf32> to vector<32x128xf32>
    %22 = arith.mulf %20, %21 : vector<32x128xf32>
    %c0_14 = arith.constant 0 : index
    %c0_15 = arith.constant 0 : index
    %23 = vector.load %arg4[%c0_14, %c0_15] : memref<1x128xf32, #tpu.memory_space<vmem>>, vector<1x128xf32>
    %24 = vector.broadcast %23 : vector<1x128xf32> to vector<32x128xf32>
    %25 = arith.addf %22, %24 : vector<32x128xf32>
    %cst_16 = arith.constant 0.000000e+00 : f32
    %26 = vector.broadcast %cst_16 : f32 to vector<32x128xf32>
    %27 = arith.maximumf %25, %26 : vector<32x128xf32>
    %28 = arith.truncf %27 : vector<32x128xf32> to vector<32x128xbf16>
    %c0_17 = arith.constant 0 : index
    %c0_18 = arith.constant 0 : index
    %29 = vector.load %arg6[%c0_17, %c0_18] : memref<32x128xbf16, #tpu.memory_space<vmem>>, vector<32x128xbf16>
    tpu.vector_store %arg6[%c0_17, %c0_18], %28 {strides = array<i32>} : memref<32x128xbf16, #tpu.memory_space<vmem>>, vector<32x128xbf16>,
    return
  }
  func.func @transform_0(%arg0: i32) -> (i32, i32) {
    %c0_i32 = arith.constant 0 : i32
    %c0_i32_0 = arith.constant 0 : i32
    %c0_i32_1 = arith.constant 0 : i32
    return %c0_i32, %c0_i32_0 : i32, i32
  }
  func.func @transform_1(%arg0: i32) -> (i32, i32) {
    %c0_i32 = arith.constant 0 : i32
    %c0_i32_0 = arith.constant 0 : i32
    return %c0_i32, %arg0 : i32, i32
  }
  func.func @transform_2(%arg0: i32) -> (i32, i32) {
    %c0_i32 = arith.constant 0 : i32
    %c0_i32_0 = arith.constant 0 : i32
    return %c0_i32, %arg0 : i32, i32
  }
  func.func @transform_3(%arg0: i32) -> (i32, i32) {
    %c0_i32 = arith.constant 0 : i32
    %c0_i32_0 = arith.constant 0 : i32
    return %c0_i32, %arg0 : i32, i32
  }
  func.func @transform_4(%arg0: i32) -> (i32, i32) {
    %c0_i32 = arith.constant 0 : i32
    return %arg0, %arg0 : i32, i32
  }
  func.func @transform_5(%arg0: i32) -> (i32, i32) {
    %c0_i32 = arith.constant 0 : i32
    %c0_i32_0 = arith.constant 0 : i32
    return %c0_i32, %arg0 : i32, i32
  }
}

module attributes {stable_mosaic.version = 11 : i64} {
  func.func @_fused_matmul_kernel(%arg0: i32, %arg1: memref<128x128xbf16, #tpu.memory_space<vmem>>, %arg2: memref<128x128xbf16, #tpu.memory_space<vmem>>, %arg3: memref<1x128xf32, #tpu.memory_space<vmem>>, %arg4: memref<128x128xf32, #tpu.memory_space<vmem>>) attributes {dimension_semantics = [#tpu.dimension_semantics<parallel>], iteration_bounds = array<i64: 1>, scalar_prefetch = 0 : i64, scratch_operands = 0 : i64, tpu.core_type = #tpu.core_type<tc>, window_params = [{pipeline_mode = #tpu.pipeline_mode<synchronous>, transform_indices = @transform_0, window_bounds = array<i64: 128, 128>}, {transform_indices = @transform_1, window_bounds = array<i64: 128, 128>}, {transform_indices = @transform_2, window_bounds = array<i64: 1, 128>}, {transform_indices = @transform_3, window_bounds = array<i64: 128, 128>}]} {
    %c0 = arith.constant 0 : index
    %c0_0 = arith.constant 0 : index
    %0 = vector.load %arg1[%c0, %c0_0] : memref<128x128xbf16, #tpu.memory_space<vmem>>, vector<128x128xbf16>
    %c0_1 = arith.constant 0 : index
    %c0_2 = arith.constant 0 : index
    %1 = vector.load %arg2[%c0_1, %c0_2] : memref<128x128xbf16, #tpu.memory_space<vmem>>, vector<128x128xbf16>
    %cst = arith.constant dense<0.000000e+00> : vector<128x128xf32>
    %2 = tpu.matmul %0, %1, %cst {dimension_numbers = #tpu.dot_dimension_numbers<[1], [0], [0], [1], [0, 0, 1, 1], [], []>} : vector<128x128xbf16>, vector<128x128xbf16>, vector<128x128xf32> -> vector<128x128xf32>
    %c0_3 = arith.constant 0 : index
    %c0_4 = arith.constant 0 : index
    %3 = vector.load %arg3[%c0_3, %c0_4] : memref<1x128xf32, #tpu.memory_space<vmem>>, vector<1x128xf32>
    %4 = vector.broadcast %3 : vector<1x128xf32> to vector<128x128xf32>
    %5 = arith.addf %2, %4 : vector<128x128xf32>
    %6 = arith.negf %5 : vector<128x128xf32>
    %7 = math.exp %6 : vector<128x128xf32>
    %cst_5 = arith.constant 1.000000e+00 : f32
    %8 = vector.broadcast %cst_5 : f32 to vector<128x128xf32>
    %9 = arith.addf %8, %7 : vector<128x128xf32>
    %10 = arith.divf %8, %9 : vector<128x128xf32>
    %c0_6 = arith.constant 0 : index
    %c0_7 = arith.constant 0 : index
    %11 = vector.load %arg4[%c0_6, %c0_7] : memref<128x128xf32, #tpu.memory_space<vmem>>, vector<128x128xf32>
    tpu.vector_store %arg4[%c0_6, %c0_7], %10 {strides = array<i32>} : memref<128x128xf32, #tpu.memory_space<vmem>>, vector<128x128xf32>,
    return
  }
  func.func @transform_0(%arg0: i32) -> (i32, i32) {
    %c0_i32 = arith.constant 0 : i32
    %c0_i32_0 = arith.constant 0 : i32
    %c0_i32_1 = arith.constant 0 : i32
    return %c0_i32, %c0_i32_0 : i32, i32
  }
  func.func @transform_1(%arg0: i32) -> (i32, i32) {
    %c0_i32 = arith.constant 0 : i32
    %c0_i32_0 = arith.constant 0 : i32
    return %c0_i32, %arg0 : i32, i32
  }
  func.func @transform_2(%arg0: i32) -> (i32, i32) {
    %c0_i32 = arith.constant 0 : i32
    %c0_i32_0 = arith.constant 0 : i32
    return %c0_i32, %arg0 : i32, i32
  }
  func.func @transform_3(%arg0: i32) -> (i32, i32) {
    %c0_i32 = arith.constant 0 : i32
    %c0_i32_0 = arith.constant 0 : i32
    return %c0_i32, %arg0 : i32, i32
  }
}

</mosaic_0001>

<bundles_post_ra>
// kernel: vae_forward.6
= control target key start
LH: loop header
LB: loop body
LE: loop exit
PB: predicated region body
PF: predicated region fallthrough
CT: control target
= control target key end

     0   :  { %v948_v19 = vmov 0.0|0.0   ;;  %vm949_vm0 = vmmov 0   ;;  %v950_v41 = vmov 0.0   ;;  %s1203_s1 = inlined_call_operand.vmem [shape: bf16[128,128], index: 1, kind: input, shape index: {}]   ;;  %s1204_s0 = inlined_call_operand.vmem [shape: bf16[128,128], index: 0, kind: input, shape index: {}]   ;;  %s1205_s4 = inlined_call_operand.vmem [shape: f32[128,128], index: 4, kind: input, shape index: {}]   ;;  %s1206_s2 = inlined_call_operand.vmem [shape: f32[1,128], index: 2, kind: input, shape index: {}]   ;;  %s1207_s3 = inlined_call_operand.vmem [shape: f32[1,128], index: 3, kind: input, shape index: {}]   ;;  %s1208_s5 = inlined_call_operand.vmem [shape: bf16[128,128], index: 5, kind: output, shape index: {}]  }
   0x1   :  { %v930_v0 = vld [vmem:[%s1203_s1] sm:$0xff]   ;;  %v931_v1 = vld [vmem:[%s1203_s1 + $0x8] sm:$0xff]   ;;  %v932_v2 = vld [vmem:[%s1203_s1 + $0x10] sm:$0xff]   ;;  %879 = vmatprep.subr.bf16.mxu1 %v948_v19  ;;  %841 = vmatprep.mubr.msk.f32.mxu1 %vm949_vm0, %v950_v41 }
   0x2   :  { %777 = vmatprep.subr.bf16.mxu0 %v930_v0  ;;  %v933_v3 = vld [vmem:[%s1203_s1 + $0x18] sm:$0xff]   ;;  %v938_v4 = vld [vmem:[%s1204_s0] sm:$0xff]   ;;  %v935_v6 = vld [vmem:[%s1203_s1 + $0x28] sm:$0xff]  }
   0x3   :  { %778 = vmatpush3.bf16.msra.mxu0 %v930_v0  ;;  %793 = vmatprep.mubr.bf16.mxu0 %v938_v4  ;;  %v934_v5 = vld [vmem:[%s1203_s1 + $0x20] sm:$0xff]   ;;  %v936_v7 = vld [vmem:[%s1203_s1 + $0x30] sm:$0xff]   ;;  %v937_v8 = vld [vmem:[%s1203_s1 + $0x38] sm:$0xff]  }
   0x4   :  { %779 = vmatprep.subr.bf16.mxu0 %v931_v1  ;;  %v939_v9 = vld [vmem:[%s1204_s0 + $0x8] sm:$0xff]   ;;  %v940_v10 = vld [vmem:[%s1204_s0 + $0x10] sm:$0xff]   ;;  %v941_v11 = vld [vmem:[%s1204_s0 + $0x18] sm:$0xff]  }
   0x5   :  { %v942_v12 = vld [vmem:[%s1204_s0 + $0x20] sm:$0xff]   ;;  %v943_v13 = vld [vmem:[%s1204_s0 + $0x28] sm:$0xff]   ;;  %v944_v14 = vld [vmem:[%s1204_s0 + $0x30] sm:$0xff]  }
   0x6   :  { %v945_v15 = vld [vmem:[%s1204_s0 + $0x38] sm:$0xff]   ;;  %v304_v16 = vld [vmem:[%s1205_s4] sm:$0xff]  ;;  %v305_v17 = vld [vmem:[%s1205_s4 + $0x8] sm:$0xff] }
   0x7   :  { %780 = vmatpush3.bf16.msra.mxu0 %v931_v1  ;;  %v880_v18 = vpack.c.bf16 %v305_v17, %v304_v16  ;;  %v306_v20 = vld [vmem:[%s1205_s4 + $0x10] sm:$0xff]  ;;  %v307_v21 = vld [vmem:[%s1205_s4 + $0x18] sm:$0xff]  ;;  %v308_v23 = vld [vmem:[%s1205_s4 + $0x20] sm:$0xff] }
   0x8   :  { %781 = vmatprep.subr.bf16.mxu0 %v932_v2  ;;  %v883_v22 = vpack.c.bf16 %v307_v21, %v306_v20  ;;  %v309_v24 = vld [vmem:[%s1205_s4 + $0x28] sm:$0xff]  ;;  %v310_v26 = vld [vmem:[%s1205_s4 + $0x30] sm:$0xff]  ;;  %v311_v27 = vld [vmem:[%s1205_s4 + $0x38] sm:$0xff] }
   0x9   :  { %881 = vmatpush3.bf16.msra.mxu1 %v880_v18  ;;  %v886_v25 = vpack.c.bf16 %v309_v24, %v308_v23  ;;  %v889_v28 = vpack.c.bf16 %v311_v27, %v310_v26  ;;  %v312_v29 = vld [vmem:[%s1205_s4 + $0x40] sm:$0xff]  ;;  %v313_v30 = vld [vmem:[%s1205_s4 + $0x48] sm:$0xff]  ;;  %v314_v32 = vld [vmem:[%s1205_s4 + $0x50] sm:$0xff] }
   0xa   :  { %882 = vmatprep.subr.bf16.mxu1 %v948_v19  ;;  %v892_v31 = vpack.c.bf16 %v313_v30, %v312_v29  ;;  %v315_v33 = vld [vmem:[%s1205_s4 + $0x58] sm:$0xff]  ;;  %v316_v35 = vld [vmem:[%s1205_s4 + $0x60] sm:$0xff]  ;;  %v317_v36 = vld [vmem:[%s1205_s4 + $0x68] sm:$0xff] }
   0xb   :  { %782 = vmatpush3.bf16.msra.mxu0 %v932_v2  ;;  %v895_v34 = vpack.c.bf16 %v315_v33, %v314_v32  ;;  %v898_v37 = vpack.c.bf16 %v317_v36, %v316_v35  ;;  %v318_v38 = vld [vmem:[%s1205_s4 + $0x70] sm:$0xff]  ;;  %v319_v39 = vld [vmem:[%s1205_s4 + $0x78] sm:$0xff] }
   0xc   :  { %783 = vmatprep.subr.bf16.mxu0 %v933_v3  ;;  %v901_v40 = vpack.c.bf16 %v319_v39, %v318_v38 }
   0xd   :  { %884 = vmatpush3.bf16.msra.mxu1 %v883_v22 }
   0xe   :  { %885 = vmatprep.subr.bf16.mxu1 %v948_v19 }
   0xf   :  { %784 = vmatpush3.bf16.msra.mxu0 %v933_v3 }
  0x10   :  { %785 = vmatprep.subr.bf16.mxu0 %v934_v5 }
  0x11   :  { %887 = vmatpush3.bf16.msra.mxu1 %v886_v25 }
  0x12   :  { %888 = vmatprep.subr.bf16.mxu1 %v948_v19 }
  0x13   :  { %786 = vmatpush3.bf16.msra.mxu0 %v934_v5 }
  0x14   :  { %787 = vmatprep.subr.bf16.mxu0 %v935_v6 }
  0x15   :  { %890 = vmatpush3.bf16.msra.mxu1 %v889_v28 }
  0x16   :  { %891 = vmatprep.subr.bf16.mxu1 %v948_v19 }
  0x17   :  { %788 = vmatpush3.bf16.msra.mxu0 %v935_v6 }
  0x18   :  { %789 = vmatprep.subr.bf16.mxu0 %v936_v7 }
  0x19   :  { %893 = vmatpush3.bf16.msra.mxu1 %v892_v31 }
  0x1a   :  { %894 = vmatprep.subr.bf16.mxu1 %v948_v19 }
  0x1b   :  { %790 = vmatpush3.bf16.msra.mxu0 %v936_v7 }
  0x1c   :  { %791 = vmatprep.subr.bf16.mxu0 %v937_v8 }
  0x1d   :  { %896 = vmatpush3.bf16.msra.mxu1 %v895_v34 }
  0x1e   :  { %897 = vmatprep.subr.bf16.mxu1 %v948_v19 }
  0x1f   :  { %792 = vmatpush3.bf16.msra.mxu0 %v937_v8 }
  0x20   :  { %903 = vmatprep.subr.bf16.mxu0 %v948_v19 }
  0x21   :  { %899 = vmatpush3.bf16.msra.mxu1 %v898_v37 }
  0x22   :  { %794 = vmatmul.mubr.bf16.vlgmr.msra.gmra.mrb[0].mxu0 %v939_v9  ;;  %900 = vmatprep.subr.bf16.mxu1 %v948_v19 }
  0x23   :  { %797 = vmatprep.mubr.bf16.mxu0 %v940_v10  ;;  %905 = vmatpush3.bf16.msra.mxu0 %v880_v18 }
  0x24   :  { %906 = vmatprep.subr.bf16.mxu0 %v948_v19 }
  0x25   :  { %902 = vmatpush3.bf16.msra.mxu1 %v901_v40 }
  0x27   :  { %908 = vmatpush3.bf16.msra.mxu0 %v883_v22 }
  0x28   :  { %909 = vmatprep.subr.bf16.mxu0 %v948_v19 }
  0x2a   :  { %798 = vmatmul.mubr.bf16.gmra.mrb[4].mxu0 %v941_v11 }
  0x2b   :  { %801 = vmatprep.mubr.bf16.mxu0 %v942_v12  ;;  %911 = vmatpush3.bf16.msra.mxu0 %v886_v25 }
  0x2c   :  { %912 = vmatprep.subr.bf16.mxu0 %v948_v19 }
  0x2f   :  { %914 = vmatpush3.bf16.msra.mxu0 %v889_v28 }
  0x30   :  { %915 = vmatprep.subr.bf16.mxu0 %v948_v19 }
  0x32   :  { %802 = vmatmul.mubr.bf16.gmra.mrb[8].mxu0 %v943_v13 }
  0x33   :  { %805 = vmatprep.mubr.bf16.mxu0 %v944_v14  ;;  %917 = vmatpush3.bf16.msra.mxu0 %v892_v31 }
  0x34   :  { %918 = vmatprep.subr.bf16.mxu0 %v948_v19 }
  0x37   :  { %920 = vmatpush3.bf16.msra.mxu0 %v895_v34 }
  0x38   :  { %921 = vmatprep.subr.bf16.mxu0 %v948_v19 }
  0x3a   :  { %806 = vmatmul.mubr.bf16.gmra.mrb[12].mxu0 %v945_v15 }
  0x3b   :  { %923 = vmatpush3.bf16.msra.mxu0 %v898_v37  ;;  %876 = vmatprep.mubr.msk.f32.mxu0 %vm949_vm0, %v950_v41 }
  0x3c   :  { %924 = vmatprep.subr.bf16.mxu0 %v948_v19 }
  0x3f   :  { %926 = vmatpush3.bf16.msra.mxu0 %v901_v40 }
  0xf5   :  { %v1077_v42 = vpop.f32.mrb[0].mxu0 }
  0xf6   :  { %v1079_v43 = vpop.f32.mrb[1].mxu0  ;;  %v269_v49 = vmul.f32 %v1077_v42, %v1077_v42 }
  0xf7   :  { %v1081_v44 = vpop.f32.mrb[2].mxu0  ;;  %v267_v46 = vmul.f32 %v1079_v43, %v1079_v43 }
  0xf8   :  { %v1083_v45 = vpop.f32.mrb[3].mxu0  ;;  %v270_v52 = vmul.f32 %v1081_v44, %v1081_v44 }
  0xf9   :  { %v246_v47 = vadd.f32 %v1083_v45, %v1079_v43  ;;  %v268_v48 = vmul.f32 %v1083_v45, %v1083_v45 }
  0xfb   :  { %v247_v50 = vadd.f32 %v1077_v42, %v246_v47  ;;  %v283_v51 = vadd.f32 %v268_v48, %v267_v46 }
  0xfd   :  { %v284_v53 = vadd.f32 %v283_v51, %v269_v49  ;;  %v1096_v54 = vpop.f32.mrb[4].mxu0  ;;  %v248_v55 = vadd.f32 %v1081_v44, %v247_v50 }
  0xfe   :  { %v1099_v56 = vpop.f32.mrb[5].mxu0  ;;  %v273_v1 = vmul.f32 %v1096_v54, %v1096_v54 }
  0xff   :  { %v249_v57 = vadd.f32 %v248_v55, %v1099_v56  ;;  %v271_v58 = vmul.f32 %v1099_v56, %v1099_v56  ;;  %v285_v59 = vadd.f32 %v284_v53, %v270_v52  ;;  %v1104_v60 = vpop.f32.mrb[6].mxu0 }
 0x100   :  { %v1106_v61 = vpop.f32.mrb[7].mxu0  ;;  %v274_v4 = vmul.f32 %v1104_v60, %v1104_v60 }
 0x101   :  { %v286_v62 = vadd.f32 %v285_v59, %v271_v58  ;;  %v250_v63 = vadd.f32 %v249_v57, %v1106_v61  ;;  %v272_v0 = vmul.f32 %v1106_v61, %v1106_v61  ;;  %v466_v58 = vlaneseq }
 0x103   :  { %v251_v2 = vadd.f32 %v1096_v54, %v250_v63  ;;  %v287_v3 = vadd.f32 %v286_v62, %v272_v0  ;;  %v467_v59 = vshrl.u32 %v466_v58, 7 }
 0x105   :  { %v288_v5 = vadd.f32 %v287_v3, %v273_v1  ;;  %v1116_v6 = vpop.f32.mrb[8].mxu0  ;;  %v252_v7 = vadd.f32 %v1104_v60, %v251_v2  ;;  %v468_v62 = vsub.s32 0, %v467_v59 }
 0x106   :  { %v1119_v8 = vpop.f32.mrb[9].mxu0  ;;  %v277_v17 = vmul.f32 %v1116_v6, %v1116_v6 }
 0x107   :  { %v253_v9 = vadd.f32 %v252_v7, %v1119_v8  ;;  %v275_v10 = vmul.f32 %v1119_v8, %v1119_v8  ;;  %v289_v11 = vadd.f32 %v288_v5, %v274_v4  ;;  %v1124_v12 = vpop.f32.mrb[10].mxu0 }
 0x108   :  { %v1126_v13 = vpop.f32.mrb[11].mxu0  ;;  %v278_v20 = vmul.f32 %v1124_v12, %v1124_v12 }
 0x109   :  { %v290_v14 = vadd.f32 %v289_v11, %v275_v10  ;;  %v254_v15 = vadd.f32 %v253_v9, %v1126_v13  ;;  %v276_v16 = vmul.f32 %v1126_v13, %v1126_v13 }
 0x10b   :  { %v255_v18 = vadd.f32 %v1116_v6, %v254_v15  ;;  %v291_v19 = vadd.f32 %v290_v14, %v276_v16 }
 0x10d   :  { %v292_v21 = vadd.f32 %v291_v19, %v277_v17  ;;  %v1136_v22 = vpop.f32.mrb[12].mxu0  ;;  %v256_v23 = vadd.f32 %v1124_v12, %v255_v18 }
 0x10e   :  { %v1139_v24 = vpop.f32.mrb[13].mxu0  ;;  %v281_v33 = vmul.f32 %v1136_v22, %v1136_v22 }
 0x10f   :  { %v257_v25 = vadd.f32 %v256_v23, %v1139_v24  ;;  %v279_v26 = vmul.f32 %v1139_v24, %v1139_v24  ;;  %v293_v27 = vadd.f32 %v292_v21, %v278_v20  ;;  %v1144_v28 = vpop.f32.mrb[14].mxu0 }
 0x110   :  { %v1146_v29 = vpop.f32.mrb[15].mxu0  ;;  %v282_v36 = vmul.f32 %v1144_v28, %v1144_v28 }
 0x111   :  { %v294_v30 = vadd.f32 %v293_v27, %v279_v26  ;;  %v258_v31 = vadd.f32 %v257_v25, %v1146_v29  ;;  %v280_v32 = vmul.f32 %v1146_v29, %v1146_v29  ;;  %v647_v27 = vld [vmem:[%s1207_s3] ss:$0 sm:$0xff] }
 0x113   :  { %v259_v34 = vadd.f32 %v1136_v22, %v258_v31  ;;  %v295_v35 = vadd.f32 %v294_v30, %v280_v32 }
 0x115   :  { %v260_v37 = vadd.f32 %v1144_v28, %v259_v34  ;;  %v296_v38 = vadd.f32 %v295_v35, %v281_v33 }
 0x117   :  { %v261_v39 = vrot.slane %v260_v37, 4  ;;  %v297_v40 = vadd.f32 %v296_v38, %v282_v36 }
 0x119   :  { %v298_v41 = vrot.slane %v297_v40, 4  ;;  %v262_v46 = vadd.f32 %v261_v39, %v260_v37 }
 0x11b   :  { %v299_v47 = vadd.f32 %v298_v41, %v297_v40  ;;  %v263_v48 = vrot.slane %v262_v46, 2 }
 0x11d   :  { %v300_v49 = vrot.slane %v299_v47, 2  ;;  %v264_v50 = vadd.f32 %v263_v48, %v262_v46 }
 0x11f   :  { %v301_v51 = vadd.f32 %v300_v49, %v299_v47  ;;  %v265_v52 = vrot.slane %v264_v50, 1 }
 0x121   :  { %v266_v53 = vadd.f32 %v265_v52, %v264_v50  ;;  %v302_v55 = vrot.slane %v301_v51, 1 }
 0x123   :  { %842 = vmatmul.mubr.f32.vlgmr.msra.gmra.mrb[0].mxu1 %v266_v53  ;;  %v303_v57 = vadd.f32 %v302_v55, %v301_v51 }
 0x125   :  { %877 = vmatmul.mubr.f32.vlgmr.msra.gmra.mrb[16].mxu0 %v303_v57 }
 0x1f6   :  { %v386_v63 = vpop.f32.mrb[0].mxu1 }
 0x1f7   :  { %v469_v0 = vrot.slane %v386_v63, %v468_v62  ;;  %v843_v1 = vpop.f32.mrb[1].mxu1  ;;  %v460_v2 = vmul.f32 %v386_v63, %v386_v63 }
 0x1f8   :  { %v456_v3 = vpop.f32.mrb[16].mxu0 }
 0x1f9   :  { %v470_v4 = vsub.f32 %v1079_v43, %v469_v0  ;;  %v471_v5 = vsub.f32 %v1083_v45, %v469_v0  ;;  %v472_v7 = vsub.f32 %v1077_v42, %v469_v0  ;;  %v473_v9 = vsub.f32 %v1081_v44, %v469_v0  ;;  %v878_v10 = vpop.f32.mrb[17].mxu0 }
 0x1fa   :  { %v474_v11 = vsub.f32 %v1099_v56, %v469_v0  ;;  %v475_v14 = vsub.f32 %v1106_v61, %v469_v0  ;;  %v476_v15 = vsub.f32 %v1096_v54, %v469_v0  ;;  %v477_v16 = vsub.f32 %v1104_v60, %v469_v0  ;;  %v462_v60 = vld [vmem:[%s1206_s2] sm:$0x1] }
 0x1fb   :  { %v478_v17 = vsub.f32 %v1119_v8, %v469_v0  ;;  %v479_v18 = vsub.f32 %v1126_v13, %v469_v0  ;;  %v480_v43 = vsub.f32 %v1116_v6, %v469_v0  ;;  %v481_v45 = vsub.f32 %v1124_v12, %v469_v0 }
 0x1fc   :  { %v482_v42 = vsub.f32 %v1139_v24, %v469_v0  ;;  %v483_v44 = vsub.f32 %v1146_v29, %v469_v0  ;;  %v484_v56 = vsub.f32 %v1136_v22, %v469_v0  ;;  %v485_v61 = vsub.f32 %v1144_v28, %v469_v0 }
 0x1fd   :  { %v461_v19 = vsub.f32 %v456_v3, %v460_v2 }
 0x1ff   :  { %v463_v54 = vadd.f32 1e-05, %v461_v19 }
 0x201   :  { %946 = vrsqrt.f32 %v463_v54 }
 0x20b   :  { %v947_v8 = vpop.eup %946 }
 0x20c   :  { %v465_v13 = vmul.f32 %v947_v8, %v462_v60 }
 0x20e   :  { %v490_v6 = vrot.slane %v465_v13, %v468_v62 }
 0x210   :  { %v492_v20 = vmul.f32 %v490_v6, %v470_v4  ;;  %v493_v12 = vmul.f32 %v490_v6, %v471_v5  ;;  %v494_v21 = vmul.f32 %v490_v6, %v472_v7  ;;  %v495_v23 = vmul.f32 %v490_v6, %v473_v9 }
 0x211   :  { %v496_v24 = vmul.f32 %v490_v6, %v474_v11  ;;  %v497_v25 = vmul.f32 %v490_v6, %v475_v14  ;;  %v498_v26 = vmul.f32 %v490_v6, %v476_v15  ;;  %v499_v22 = vmul.f32 %v490_v6, %v477_v16 }
 0x212   :  { %v500_v28 = vmul.f32 %v490_v6, %v478_v17  ;;  %v501_v29 = vmul.f32 %v490_v6, %v479_v18  ;;  %v502_v30 = vmul.f32 %v490_v6, %v480_v43  ;;  %v503_v31 = vmul.f32 %v490_v6, %v481_v45 }
 0x213   :  { %v504_v32 = vmul.f32 %v490_v6, %v482_v42  ;;  %v505_v33 = vmul.f32 %v490_v6, %v483_v44  ;;  %v506_v34 = vmul.f32 %v490_v6, %v484_v56  ;;  %v507_v35 = vmul.f32 %v490_v6, %v485_v61 }
 0x214   :  { %v515_v36 = vadd.f32 %v647_v27, %v492_v20  ;;  %v516_v37 = vadd.f32 %v647_v27, %v493_v12  ;;  %v517_v38 = vadd.f32 %v647_v27, %v494_v21  ;;  %v518_v39 = vadd.f32 %v647_v27, %v495_v23 }
 0x215   :  { %v519_v40 = vadd.f32 %v647_v27, %v496_v24  ;;  %v520_v41 = vadd.f32 %v647_v27, %v497_v25  ;;  %v521_v46 = vadd.f32 %v647_v27, %v498_v26  ;;  %v522_v47 = vadd.f32 %v647_v27, %v499_v22 }
 0x216   :  { %v523_v48 = vadd.f32 %v647_v27, %v500_v28  ;;  %v524_v49 = vadd.f32 %v647_v27, %v501_v29  ;;  %v525_v50 = vadd.f32 %v647_v27, %v502_v30  ;;  %v526_v51 = vadd.f32 %v647_v27, %v503_v31 }
 0x217   :  { %v527_v52 = vadd.f32 %v647_v27, %v504_v32  ;;  %v528_v53 = vadd.f32 %v647_v27, %v505_v33  ;;  %v529_v55 = vadd.f32 %v647_v27, %v506_v34  ;;  %v530_v57 = vadd.f32 %v647_v27, %v507_v35 }
 0x218   :  { %v531_v58 = vmax.f32 %v515_v36, 0.0  ;;  %v532_v59 = vmax.f32 %v516_v37, 0.0  ;;  %v533_v62 = vmax.f32 %v517_v38, 0.0  ;;  %v534_v63 = vmax.f32 %v518_v39, 0.0 }
 0x219   :  { %v535_v0 = vmax.f32 %v519_v40, 0.0  ;;  %v536_v1 = vmax.f32 %v520_v41, 0.0  ;;  %v537_v2 = vmax.f32 %v521_v46, 0.0  ;;  %v538_v3 = vmax.f32 %v522_v47, 0.0 }
 0x21a   :  { %v539_v4 = vmax.f32 %v523_v48, 0.0  ;;  %v540_v5 = vmax.f32 %v524_v49, 0.0  ;;  %v541_v7 = vmax.f32 %v525_v50, 0.0  ;;  %v542_v9 = vmax.f32 %v526_v51, 0.0 }
 0x21b   :  { %v543_v10 = vmax.f32 %v527_v52, 0.0  ;;  %v544_v11 = vmax.f32 %v528_v53, 0.0  ;;  %v545_v14 = vmax.f32 %v529_v55, 0.0  ;;  %v546_v15 = vmax.f32 %v530_v57, 0.0 }
 0x21c   :  { %v683_v16 = vpack.c.bf16 %v532_v59, %v531_v58  ;;  %v688_v17 = vpack.c.bf16 %v534_v63, %v533_v62  ;;  %v693_v18 = vpack.c.bf16 %v536_v1, %v535_v0  ;;  %v698_v43 = vpack.c.bf16 %v538_v3, %v537_v2 }
 0x21d   :  { %v703_v45 = vpack.c.bf16 %v540_v5, %v539_v4  ;;  %v708_v42 = vpack.c.bf16 %v542_v9, %v541_v7  ;;  %v713_v44 = vpack.c.bf16 %v544_v11, %v543_v10  ;;  %v718_v56 = vpack.c.bf16 %v546_v15, %v545_v14 }
 0x21e   :  { %684 = vst [vmem:[%s1208_s5] sm:$0xff] %v683_v16   ;;  %720 = vst [vmem:[%s1208_s5 + $0x8] sm:$0xff] %v688_v17  }
 0x21f   :  { %721 = vst [vmem:[%s1208_s5 + $0x10] sm:$0xff] %v693_v18   ;;  %722 = vst [vmem:[%s1208_s5 + $0x18] sm:$0xff] %v698_v43  }
 0x220   :  { %723 = vst [vmem:[%s1208_s5 + $0x20] sm:$0xff] %v703_v45   ;;  %724 = vst [vmem:[%s1208_s5 + $0x28] sm:$0xff] %v708_v42  }
 0x221   :  { %725 = vst [vmem:[%s1208_s5 + $0x30] sm:$0xff] %v713_v44   ;;  %726 = vst [vmem:[%s1208_s5 + $0x38] sm:$0xff] %v718_v56  }

// kernel: vae_forward.7
= control target key start
LH: loop header
LB: loop body
LE: loop exit
PB: predicated region body
PF: predicated region fallthrough
CT: control target
= control target key end

     0   :  { %v618_v1 = vmov 0.0|0.0   ;;  %vm619_vm0 = vmmov 0   ;;  %v620_v34 = vmov 0.0   ;;  %v334_v62 = vlaneseq  ;;  %s757_s1 = inlined_call_operand.vmem [shape: bf16[128,128], index: 1, kind: input, shape index: {}]   ;;  %s758_s0 = inlined_call_operand.vmem [shape: bf16[32,128], index: 0, kind: input, shape index: {}]   ;;  %s759_s4 = inlined_call_operand.vmem [shape: f32[128,128], index: 4, kind: input, shape index: {}]   ;;  %s760_s2 = inlined_call_operand.vmem [shape: f32[1,128], index: 2, kind: input, shape index: {}]   ;;  %s761_s3 = inlined_call_operand.vmem [shape: f32[1,128], index: 3, kind: input, shape index: {}]   ;;  %s762_s5 = inlined_call_operand.vmem [shape: bf16[32,128], index: 5, kind: output, shape index: {}]  }
   0x1   :  { %v606_v0 = vld [vmem:[%s757_s1] sm:$0xff]   ;;  %555 = vmatprep.subr.bf16.mxu1 %v618_v1  ;;  %v607_v2 = vld [vmem:[%s757_s1 + $0x8] sm:$0xff]   ;;  %v608_v3 = vld [vmem:[%s757_s1 + $0x10] sm:$0xff]   ;;  %517 = vmatprep.mubr.msk.f32.mxu1 %vm619_vm0, %v620_v34 }
   0x2   :  { %465 = vmatprep.subr.bf16.mxu0 %v606_v0  ;;  %v609_v4 = vld [vmem:[%s757_s1 + $0x18] sm:$0xff]   ;;  %v614_v5 = vld [vmem:[%s758_s0] sm:$0xff]   ;;  %v173_v7 = vld [vmem:[%s759_s4 + $0x8] sm:$0xff]  ;;  %v335_v63 = vshrl.u32 %v334_v62, 7 }
   0x3   :  { %466 = vmatpush3.bf16.msra.mxu0 %v606_v0  ;;  %481 = vmatprep.mubr.bf16.mxu0 %v614_v5  ;;  %v172_v6 = vld [vmem:[%s759_s4] sm:$0xff]  ;;  %v174_v8 = vld [vmem:[%s759_s4 + $0x10] sm:$0xff]  ;;  %v175_v10 = vld [vmem:[%s759_s4 + $0x18] sm:$0xff] }
   0x4   :  { %467 = vmatprep.subr.bf16.mxu0 %v607_v2  ;;  %v556_v9 = vpack.c.bf16 %v173_v7, %v172_v6  ;;  %v610_v11 = vld [vmem:[%s757_s1 + $0x20] sm:$0xff]   ;;  %v559_v12 = vpack.c.bf16 %v175_v10, %v174_v8  ;;  %v177_v14 = vld [vmem:[%s759_s4 + $0x28] sm:$0xff]  ;;  %v612_v17 = vld [vmem:[%s757_s1 + $0x30] sm:$0xff]   ;;  %v336_v0 = vsub.s32 0, %v335_v63 }
   0x5   :  { %v176_v13 = vld [vmem:[%s759_s4 + $0x20] sm:$0xff]  ;;  %v611_v15 = vld [vmem:[%s757_s1 + $0x28] sm:$0xff]   ;;  %v613_v18 = vld [vmem:[%s757_s1 + $0x38] sm:$0xff]  }
   0x6   :  { %557 = vmatpush3.bf16.msra.mxu1 %v556_v9  ;;  %v562_v16 = vpack.c.bf16 %v177_v14, %v176_v13  ;;  %v615_v19 = vld [vmem:[%s758_s0 + $0x8] sm:$0xff]   ;;  %v178_v20 = vld [vmem:[%s759_s4 + $0x30] sm:$0xff]  ;;  %v179_v21 = vld [vmem:[%s759_s4 + $0x38] sm:$0xff] }
   0x7   :  { %468 = vmatpush3.bf16.msra.mxu0 %v607_v2  ;;  %558 = vmatprep.subr.bf16.mxu1 %v618_v1  ;;  %v565_v22 = vpack.c.bf16 %v179_v21, %v178_v20  ;;  %v180_v23 = vld [vmem:[%s759_s4 + $0x40] sm:$0xff]  ;;  %v181_v24 = vld [vmem:[%s759_s4 + $0x48] sm:$0xff]  ;;  %v182_v26 = vld [vmem:[%s759_s4 + $0x50] sm:$0xff] }
   0x8   :  { %469 = vmatprep.subr.bf16.mxu0 %v608_v3  ;;  %v568_v25 = vpack.c.bf16 %v181_v24, %v180_v23  ;;  %v183_v27 = vld [vmem:[%s759_s4 + $0x58] sm:$0xff]  ;;  %v184_v29 = vld [vmem:[%s759_s4 + $0x60] sm:$0xff]  ;;  %v185_v30 = vld [vmem:[%s759_s4 + $0x68] sm:$0xff] }
   0x9   :  { %v571_v28 = vpack.c.bf16 %v183_v27, %v182_v26  ;;  %v186_v31 = vld [vmem:[%s759_s4 + $0x70] sm:$0xff]  ;;  %v574_v32 = vpack.c.bf16 %v185_v30, %v184_v29  ;;  %v187_v33 = vld [vmem:[%s759_s4 + $0x78] sm:$0xff]  ;;  %v330_v13 = vld [vmem:[%s760_s2] sm:$0x1] }
   0xa   :  { %560 = vmatpush3.bf16.msra.mxu1 %v559_v12  ;;  %v577_v35 = vpack.c.bf16 %v187_v33, %v186_v31 }
   0xb   :  { %470 = vmatpush3.bf16.msra.mxu0 %v608_v3  ;;  %561 = vmatprep.subr.bf16.mxu1 %v618_v1 }
   0xc   :  { %471 = vmatprep.subr.bf16.mxu0 %v609_v4 }
   0xe   :  { %563 = vmatpush3.bf16.msra.mxu1 %v562_v16 }
   0xf   :  { %472 = vmatpush3.bf16.msra.mxu0 %v609_v4  ;;  %564 = vmatprep.subr.bf16.mxu1 %v618_v1 }
  0x10   :  { %473 = vmatprep.subr.bf16.mxu0 %v610_v11 }
  0x12   :  { %566 = vmatpush3.bf16.msra.mxu1 %v565_v22 }
  0x13   :  { %474 = vmatpush3.bf16.msra.mxu0 %v610_v11  ;;  %567 = vmatprep.subr.bf16.mxu1 %v618_v1 }
  0x14   :  { %475 = vmatprep.subr.bf16.mxu0 %v611_v15 }
  0x16   :  { %569 = vmatpush3.bf16.msra.mxu1 %v568_v25 }
  0x17   :  { %476 = vmatpush3.bf16.msra.mxu0 %v611_v15  ;;  %570 = vmatprep.subr.bf16.mxu1 %v618_v1 }
  0x18   :  { %477 = vmatprep.subr.bf16.mxu0 %v612_v17 }
  0x1a   :  { %572 = vmatpush3.bf16.msra.mxu1 %v571_v28 }
  0x1b   :  { %478 = vmatpush3.bf16.msra.mxu0 %v612_v17  ;;  %573 = vmatprep.subr.bf16.mxu1 %v618_v1  ;;  %v401_v17 = vld [vmem:[%s761_s3] ss:$0 sm:$0xff] }
  0x1c   :  { %479 = vmatprep.subr.bf16.mxu0 %v613_v18 }
  0x1e   :  { %575 = vmatpush3.bf16.msra.mxu1 %v574_v32 }
  0x1f   :  { %480 = vmatpush3.bf16.msra.mxu0 %v613_v18  ;;  %576 = vmatprep.subr.bf16.mxu1 %v618_v1 }
  0x20   :  { %579 = vmatprep.subr.bf16.mxu0 %v618_v1 }
  0x22   :  { %482 = vmatmul.mubr.bf16.vlgmr.msra.gmra.mrb[0].mxu0 %v615_v19  ;;  %578 = vmatpush3.bf16.msra.mxu1 %v577_v35 }
  0x23   :  { %581 = vmatpush3.bf16.msra.mxu0 %v556_v9  ;;  %552 = vmatprep.mubr.msk.f32.mxu0 %vm619_vm0, %v620_v34 }
  0x24   :  { %582 = vmatprep.subr.bf16.mxu0 %v618_v1 }
  0x27   :  { %584 = vmatpush3.bf16.msra.mxu0 %v559_v12 }
  0x28   :  { %585 = vmatprep.subr.bf16.mxu0 %v618_v1 }
  0x2b   :  { %587 = vmatpush3.bf16.msra.mxu0 %v562_v16 }
  0x2c   :  { %588 = vmatprep.subr.bf16.mxu0 %v618_v1 }
  0x2f   :  { %590 = vmatpush3.bf16.msra.mxu0 %v565_v22 }
  0x30   :  { %591 = vmatprep.subr.bf16.mxu0 %v618_v1 }
  0x33   :  { %593 = vmatpush3.bf16.msra.mxu0 %v568_v25 }
  0x34   :  { %594 = vmatprep.subr.bf16.mxu0 %v618_v1 }
  0x37   :  { %596 = vmatpush3.bf16.msra.mxu0 %v571_v28 }
  0x38   :  { %597 = vmatprep.subr.bf16.mxu0 %v618_v1 }
  0x3b   :  { %599 = vmatpush3.bf16.msra.mxu0 %v574_v32 }
  0x3c   :  { %600 = vmatprep.subr.bf16.mxu0 %v618_v1 }
  0x3f   :  { %602 = vmatpush3.bf16.msra.mxu0 %v577_v35 }
  0xf5   :  { %v483_v36 = vpop.f32.mrb[0].mxu0 }
  0xf6   :  { %v135_v37 = vpop.f32.mrb[1].mxu0  ;;  %v161_v43 = vmul.f32 %v483_v36, %v483_v36 }
  0xf7   :  { %v484_v38 = vpop.f32.mrb[2].mxu0  ;;  %v159_v40 = vmul.f32 %v135_v37, %v135_v37 }
  0xf8   :  { %v138_v39 = vpop.f32.mrb[3].mxu0  ;;  %v162_v46 = vmul.f32 %v484_v38, %v484_v38 }
  0xf9   :  { %v150_v41 = vadd.f32 %v138_v39, %v135_v37  ;;  %v160_v42 = vmul.f32 %v138_v39, %v138_v39 }
  0xfb   :  { %v151_v44 = vadd.f32 %v483_v36, %v150_v41  ;;  %v163_v45 = vadd.f32 %v160_v42, %v159_v40 }
  0xfd   :  { %v152_v47 = vadd.f32 %v484_v38, %v151_v44  ;;  %v164_v48 = vadd.f32 %v163_v45, %v161_v43 }
  0xff   :  { %v153_v49 = vrot.slane %v152_v47, 4  ;;  %v165_v50 = vadd.f32 %v164_v48, %v162_v46 }
 0x101   :  { %v166_v51 = vrot.slane %v165_v50, 4  ;;  %v154_v52 = vadd.f32 %v153_v49, %v152_v47 }
 0x103   :  { %v155_v53 = vrot.slane %v154_v52, 2  ;;  %v167_v54 = vadd.f32 %v166_v51, %v165_v50 }
 0x105   :  { %v156_v55 = vadd.f32 %v155_v53, %v154_v52  ;;  %v168_v56 = vrot.slane %v167_v54, 2 }
 0x107   :  { %v157_v57 = vrot.slane %v156_v55, 1  ;;  %v169_v58 = vadd.f32 %v168_v56, %v167_v54 }
 0x109   :  { %v158_v59 = vadd.f32 %v157_v57, %v156_v55  ;;  %v170_v60 = vrot.slane %v169_v58, 1 }
 0x10b   :  { %518 = vmatmul.mubr.f32.vlgmr.msra.gmra.mrb[0].mxu1 %v158_v59  ;;  %v171_v61 = vadd.f32 %v170_v60, %v169_v58 }
 0x10d   :  { %553 = vmatmul.mubr.f32.vlgmr.msra.gmra.mrb[4].mxu0 %v171_v61 }
 0x1de   :  { %v254_v1 = vpop.f32.mrb[0].mxu1 }
 0x1df   :  { %v328_v2 = vmul.f32 %v254_v1, %v254_v1  ;;  %v337_v3 = vrot.slane %v254_v1, %v336_v0  ;;  %v519_v4 = vpop.f32.mrb[1].mxu1 }
 0x1e0   :  { %v324_v5 = vpop.f32.mrb[4].mxu0 }
 0x1e1   :  { %v338_v6 = vsub.f32 %v135_v37, %v337_v3  ;;  %v339_v7 = vsub.f32 %v138_v39, %v337_v3  ;;  %v340_v8 = vsub.f32 %v483_v36, %v337_v3  ;;  %v341_v9 = vsub.f32 %v484_v38, %v337_v3  ;;  %v554_v10 = vpop.f32.mrb[5].mxu0 }
 0x1e2   :  { %v329_v11 = vsub.f32 %v324_v5, %v328_v2 }
 0x1e4   :  { %v331_v12 = vadd.f32 1e-05, %v329_v11 }
 0x1e6   :  { %616 = vrsqrt.f32 %v331_v12 }
 0x1f0   :  { %v617_v14 = vpop.eup %616 }
 0x1f1   :  { %v333_v15 = vmul.f32 %v617_v14, %v330_v13 }
 0x1f3   :  { %v346_v16 = vrot.slane %v333_v15, %v336_v0 }
 0x1f5   :  { %v348_v18 = vmul.f32 %v346_v16, %v338_v6  ;;  %v349_v19 = vmul.f32 %v346_v16, %v339_v7  ;;  %v350_v20 = vmul.f32 %v346_v16, %v340_v8  ;;  %v351_v21 = vmul.f32 %v346_v16, %v341_v9 }
 0x1f7   :  { %v359_v22 = vadd.f32 %v401_v17, %v348_v18  ;;  %v360_v23 = vadd.f32 %v401_v17, %v349_v19  ;;  %v361_v24 = vadd.f32 %v401_v17, %v350_v20  ;;  %v362_v25 = vadd.f32 %v401_v17, %v351_v21 }
 0x1f9   :  { %v363_v26 = vmax.f32 %v359_v22, 0.0  ;;  %v364_v27 = vmax.f32 %v360_v23, 0.0  ;;  %v365_v28 = vmax.f32 %v361_v24, 0.0  ;;  %v366_v29 = vmax.f32 %v362_v25, 0.0 }
 0x1fb   :  { %v413_v30 = vpack.c.bf16 %v364_v27, %v363_v26  ;;  %v418_v31 = vpack.c.bf16 %v366_v29, %v365_v28 }
 0x1fd   :  { %414 = vst [vmem:[%s762_s5] sm:$0xff] %v413_v30   ;;  %420 = vst [vmem:[%s762_s5 + $0x8] sm:$0xff] %v418_v31  }

// kernel: custom-call.2
= control target key start
LH: loop header
LB: loop body
LE: loop exit
PB: predicated region body
PF: predicated region fallthrough
CT: control target
= control target key end

     0   :  { %s367_s6 = smov 0   ;;  %s369_s7 = smov 0   ;;  %s414_s0 = inlined_call_operand.vmem [shape: f32[2,4,4], index: 0, kind: input, shape index: {}]   ;;  %s415_s1 = inlined_call_operand.vmem [shape: f32[2,4,4], index: 1, kind: output, shape index: {}]  }
   0x1   :  { %s371_s8 = smov 0  }
   0x2 LB: > { %s287_s9 = sadd.s32 4294967295, %s354_s8   ;;  %s26_s10 = sadd.s32 1, %s350_s7  ;;  %s354_s8 = sphi %s371_s8, %s7_s8   ;;  %s350_s7 = sphi %s369_s7, %s417_s7   ;;  %s346_s6 = sphi %s367_s6, %s416_s6  }
   0x3   : > { %p28_p0 = scmp.ge.s32.totalorder %s26_s10, 2  ;;  %p289_p1 = scmp.ge.s32.totalorder %s354_s8, 2 }
   0x4   : > { %s42_s11 = sand.u32 (!%p289_p1), 1, %s354_s8   ;;  %s291_s12 = sshll.u32 (!%p289_p1), %s350_s7, 2 }
   0x5   : > { %s419_s10 = smov (%p28_p0, %s26_s10), 0  ;;  %40 = sbr.rel (%p289_p1) target bundleno = 12 (0xc), region = 16 }
   0x6   : > { %s290_s13 = sshll.u32 (!%p289_p1), %s42_s11, 2  ;;  %s48_s16 = scalar_lea.vmem (!%p289_p1), %s414_s0, %s291_s12 }
   0x7   : > { %v64_v0 = vld [vmem:[%s48_s16] sm:$0xf] (!%p289_p1)  ;;  %s44_s17 = scalar_lea.vmem (!%p289_p1), [#allocation1], %s290_s13 }
   0x8   : > { %65 = vst [vmem:[%s44_s17] sm:$0xf] (!%p289_p1), %v64_v0 }
   0xc PF: > { %p292_p2 = scmp.ge.s32.totalorder %s354_s8, 1  ;;  %p81_p3 = scmp.lt.s32.totalorder %s354_s8, 3 }
   0xe   : > { %p82_p4 = pnand %p292_p2, %p81_p3 }
   0xf   : > { %v356_v1 = vmov (!%p82_p4), 0.0   ;;  %s394_s18 = sand.u32 (!%p82_p4), 1, %s287_s9   ;;  %vm104_vm0 = vcmask (!%p82_p4), 7168   ;;  %vm122_vm1 = vcmask (!%p82_p4), 15368   ;;  %vm139_vm2 = vcmask (!%p82_p4), 1047553   ;;  %s296_s22 = sshll.u32 (!%p82_p4), %s346_s6, 2 }
  0x10   : > { %85 = sbr.rel (%p82_p4) target bundleno = 711 (0x2c7), region = 50  ;;  %103 = vst [vmem:[#allocation2] sm:$0xff] (!%p82_p4), %v356_v1  ;;  %s293_s19 = sshll.u32 (!%p82_p4), %s394_s18, 2  ;;  %vm140_vm3 = vmand (!%p82_p4), %vm122_vm1, %vm139_vm2  ;;  %vm144_vm4 = vcmask (!%p82_p4), 23568   ;;  %vm161_vm5 = vcmask (!%p82_p4), 1047554   ;;  %vm166_vm7 = vcmask (!%p82_p4), 31768  }
  0x11   : > { %s94_s20 = scalar_lea.vmem (!%p82_p4), [#allocation1], %s293_s19  ;;  %vm162_vm6 = vmand (!%p82_p4), %vm144_vm4, %vm161_vm5  ;;  %vm183_vm8 = vcmask (!%p82_p4), 1047555   ;;  %s98_s21 = scalar_lea.vmem (!%p82_p4), [#allocation3], %s293_s19 }
  0x12   : > { %v101_v5 = vld [vmem:[%s94_s20] sm:$0xf] (!%p82_p4)  ;;  %vm184_vm9 = vmand (!%p82_p4), %vm166_vm7, %vm183_vm8  ;;  %s201_s25 = scalar_lea.vmem (!%p82_p4), %s415_s1, %s296_s22 }
  0x13   : > { %102 = vst [vmem:[#allocation0] sm:$0xf] (!%p82_p4), %v101_v5 }
  0x17   : > { %v105_v2 = vld [vmem:[#allocation2] ss:$0 sm:$0xff] }
  0x18   : > { %v107_v3 = vmul.f32 %v105_v2, %v105_v2  ;;  %v114_v4 = vmul.f32 0.0, %v105_v2 }
  0x1a   : > { %108 = vadd.xlane.f32.xlu0 %v107_v3  ;;  %v106_v6 = vld [vmem:[#allocation0] ss:$0 sm:$0xff]  ;;  %v126_v18 = vld [vmem:[#allocation0 + $0x1] ss:$0 sm:$0xff]  ;;  %v148_v30 = vld [vmem:[#allocation0 + $0x2] ss:$0 sm:$0xff] }
  0x1b   : > { %v112_v10 = vld [vmem:[#allocation0] sm:$0xff] }
  0x1c   : > { %v170_v42 = vld [vmem:[#allocation0 + $0x3] ss:$0 sm:$0xff] }
  0x1e   : > { %115 = vadd.xlane.f32.xlu0 %v114_v4 }
  0xa7   : > { %v109_v7 = vpop.xlane.xlu0 %108 }
  0xa8   : > { %v110_v8 = vsub.f32 %v106_v6, %v109_v7 }
  0xaa   : > { %324 = vrsqrt.f32 %v110_v8 }
  0xab   : > { %v116_v9 = vpop.xlane.xlu0 %115 }
  0xac   : > { %v117_v11 = vsub.f32 %v112_v10, %v116_v9 }
  0xb4   : > { %v325_v12 = vpop.eup %324 }
  0xb5   : > { %v118_v13 = vmul.f32 %v325_v12, %v117_v11 }
  0xb7   : > { %v119_v14 = vsel %vm104_vm0, %v118_v13, 0.0 }
  0xb8   : > { %121 = vst [vmem:[#allocation2] sm:$0xff] %v119_v14 }
  0xbf   : > { %v124_v15 = vld [vmem:[#allocation2 + $0x1] ss:$0 sm:$0xff] }
  0xc0   : > { %v127_v16 = vmul.f32 %v124_v15, %v124_v15  ;;  %v134_v17 = vmul.f32 %v124_v15, %v119_v14 }
  0xc2   : > { %128 = vadd.xlane.f32.xlu1 %v127_v16 }
  0xc6   : > { %135 = vadd.xlane.f32.xlu1 %v134_v17 }
 0x14f   : > { %v129_v19 = vpop.xlane.xlu1 %128 }
 0x150   : > { %v130_v20 = vsub.f32 %v126_v18, %v129_v19 }
 0x152   : > { %326 = vrsqrt.f32 %v130_v20 }
 0x153   : > { %v136_v21 = vpop.xlane.xlu1 %135 }
 0x154   : > { %v137_v22 = vsub.f32 %v112_v10, %v136_v21 }
 0x15c   : > { %v327_v23 = vpop.eup %326 }
 0x15d   : > { %v138_v24 = vmul.f32 %v327_v23, %v137_v22 }
 0x15f   : > { %v141_v25 = vsel %vm140_vm3, %v138_v24, 0.0 }
 0x160   : > { %v142_v26 = vadd.f32 %v141_v25, %v119_v14 }
 0x162   : > { %143 = vst [vmem:[#allocation2] sm:$0xff] %v142_v26 }
 0x169   : > { %v146_v27 = vld [vmem:[#allocation2 + $0x2] ss:$0 sm:$0xff] }
 0x16a   : > { %v156_v28 = vmul.f32 %v146_v27, %v142_v26  ;;  %v149_v29 = vmul.f32 %v146_v27, %v146_v27 }
 0x16c   : > { %157 = vadd.xlane.f32.xlu1 %v156_v28  ;;  %150 = vadd.xlane.f32.xlu0 %v149_v29 }
 0x1f9   : > { %v151_v31 = vpop.xlane.xlu0 %150  ;;  %v158_v33 = vpop.xlane.xlu1 %157 }
 0x1fa   : > { %v152_v32 = vsub.f32 %v148_v30, %v151_v31  ;;  %v159_v34 = vsub.f32 %v112_v10, %v158_v33 }
 0x1fc   : > { %328 = vrsqrt.f32 %v152_v32 }
 0x206   : > { %v329_v35 = vpop.eup %328 }
 0x207   : > { %v160_v36 = vmul.f32 %v329_v35, %v159_v34 }
 0x209   : > { %v163_v37 = vsel %vm162_vm6, %v160_v36, 0.0 }
 0x20a   : > { %v164_v38 = vadd.f32 %v163_v37, %v142_v26 }
 0x20c   : > { %165 = vst [vmem:[#allocation2] sm:$0xff] %v164_v38 }
 0x213   : > { %v168_v39 = vld [vmem:[#allocation2 + $0x3] ss:$0 sm:$0xff] }
 0x214   : > { %v178_v40 = vmul.f32 %v168_v39, %v164_v38  ;;  %v171_v41 = vmul.f32 %v168_v39, %v168_v39 }
 0x216   : > { %179 = vadd.xlane.f32.xlu1 %v178_v40  ;;  %172 = vadd.xlane.f32.xlu0 %v171_v41 }
 0x2a3   : > { %v173_v43 = vpop.xlane.xlu0 %172  ;;  %v180_v45 = vpop.xlane.xlu1 %179 }
 0x2a4   : > { %v174_v44 = vsub.f32 %v170_v42, %v173_v43  ;;  %v181_v46 = vsub.f32 %v112_v10, %v180_v45 }
 0x2a6   : > { %330 = vrsqrt.f32 %v174_v44 }
 0x2b0   : > { %v331_v47 = vpop.eup %330 }
 0x2b1   : > { %v182_v48 = vmul.f32 %v331_v47, %v181_v46 }
 0x2b3   : > { %v185_v49 = vsel %vm184_vm9, %v182_v48, 0.0 }
 0x2b4   : > { %v186_v50 = vadd.f32 %v185_v49, %v164_v38 }
 0x2b6   : > { %187 = vst [vmem:[#allocation2] sm:$0xff] %v186_v50 }
 0x2bd   : > { %v191_v51 = vld [vmem:[#allocation2] sm:$0xf] }
 0x2be   : > { %193 = vst [vmem:[%s98_s21] sm:$0xf] %v191_v51 }
 0x2c5   : > { %v217_v52 = vld [vmem:[%s98_s21] sm:$0xf] }
 0x2c6   : > { %218 = vst [vmem:[%s201_s25] sm:$0xf] %v217_v52 }
 0x2c7 PF: > { %s7_s8 = sadd.s32 1, %s354_s8   ;;  %s416_s6 = smov %s350_s7 }
 0x2c8   : > { %p4_p5 = scmp.ge.s32.totalorder %s7_s8, 4   ;;  %s417_s7 = smov %s419_s10 }
 0x2ca   :  { %6 = sbr.rel (!%p4_p5) target bundleno = 2 (0x2), region = 116 }

// kernel: vae_forward.8
= control target key start
LH: loop header
LB: loop body
LE: loop exit
PB: predicated region body
PF: predicated region fallthrough
CT: control target
= control target key end

     0   :  { %s339_s1 = inlined_call_operand.vmem [shape: bf16[256,128], index: 1, kind: input, shape index: {}]   ;;  %s340_s0 = inlined_call_operand.vmem [shape: bf16[8,256], index: 0, kind: input, shape index: {}]   ;;  %s341_s2 = inlined_call_operand.vmem [shape: f32[1,128], index: 2, kind: input, shape index: {}]   ;;  %s342_s3 = inlined_call_operand.vmem [shape: f32[8,128], index: 3, kind: output, shape index: {}]  }
   0x1   :  { %v244_v0 = vld [vmem:[%s339_s1 + $0x40] sm:$0xff]   ;;  %v246_v2 = vld [vmem:[%s339_s1 + $0x48] sm:$0xff]   ;;  %v248_v4 = vld [vmem:[%s339_s1 + $0x50] sm:$0xff]  }
   0x2   :  { %v245_v1 = vld [vmem:[%s339_s1] sm:$0xff]   ;;  %222 = vmatprep.subr.bf16.mxu0 %v244_v0  ;;  %v247_v3 = vld [vmem:[%s339_s1 + $0x8] sm:$0xff]   ;;  %v249_v5 = vld [vmem:[%s339_s1 + $0x10] sm:$0xff]  }
   0x3   :  { %223 = vmatpush3.bf16.msra.mxu0 %v245_v1  ;;  %v250_v6 = vld [vmem:[%s339_s1 + $0x58] sm:$0xff]   ;;  %v252_v8 = vld [vmem:[%s339_s1 + $0x60] sm:$0xff]   ;;  %v254_v10 = vld [vmem:[%s339_s1 + $0x68] sm:$0xff]  }
   0x4   :  { %224 = vmatprep.subr.bf16.mxu0 %v246_v2  ;;  %v251_v7 = vld [vmem:[%s339_s1 + $0x18] sm:$0xff]   ;;  %v253_v9 = vld [vmem:[%s339_s1 + $0x20] sm:$0xff]   ;;  %v255_v13 = vld [vmem:[%s339_s1 + $0x28] sm:$0xff]  }
   0x5   :  { %v15_v11 = vld [vmem:[%s340_s0] sm:$0xff]  ;;  %v256_v14 = vld [vmem:[%s339_s1 + $0x70] sm:$0xff]   ;;  %v258_v16 = vld [vmem:[%s339_s1 + $0x78] sm:$0xff]  }
   0x6   :  { %v205_v12 = vcombine.high %v15_v11, %v15_v11  ;;  %v257_v15 = vld [vmem:[%s339_s1 + $0x30] sm:$0xff]   ;;  %v259_v17 = vld [vmem:[%s339_s1 + $0x38] sm:$0xff]   ;;  %v204_v18 = vcombine.low %v15_v11, %v15_v11  ;;  %v203_v20 = vld [vmem:[%s341_s2] ss:$0 sm:$0xff] }
   0x7   :  { %225 = vmatpush3.bf16.msra.mxu0 %v247_v3 }
   0x8   :  { %226 = vmatprep.subr.bf16.mxu0 %v248_v4  ;;  %190 = vmatprep.mubr.bf16.mxu0 %v205_v12 }
   0xb   :  { %227 = vmatpush3.bf16.msra.mxu0 %v249_v5 }
   0xc   :  { %228 = vmatprep.subr.bf16.mxu0 %v250_v6 }
   0xf   :  { %229 = vmatpush3.bf16.msra.mxu0 %v251_v7 }
  0x10   :  { %230 = vmatprep.subr.bf16.mxu0 %v252_v8 }
  0x13   :  { %231 = vmatpush3.bf16.msra.mxu0 %v253_v9 }
  0x14   :  { %232 = vmatprep.subr.bf16.mxu0 %v254_v10 }
  0x17   :  { %233 = vmatpush3.bf16.msra.mxu0 %v255_v13 }
  0x18   :  { %234 = vmatprep.subr.bf16.mxu0 %v256_v14 }
  0x1b   :  { %235 = vmatpush3.bf16.msra.mxu0 %v257_v15 }
  0x1c   :  { %236 = vmatprep.subr.bf16.mxu0 %v258_v16 }
  0x1f   :  { %237 = vmatpush3.bf16.msra.mxu0 %v259_v17 }
  0x22   :  { %191 = vmatmul.mubr.bf16.vlgmr.msra.gmra.mrb[0].mxu0 %v204_v18 }
  0xf5   :  { %v238_v19 = vpop.f32.mrb[0].mxu0 }
  0xf6   :  { %v239_v21 = vpop.f32.mrb[1].mxu0 }
  0xf7   :  { %v240_v22 = vadd.f32 %v239_v21, %v238_v19  ;;  %v241_v23 = vpop.f32.mrb[2].mxu0 }
  0xf8   :  { %v242_v24 = vpop.f32.mrb[3].mxu0 }
  0xf9   :  { %v193_v25 = vadd.f32 %v240_v22, %v203_v20 }
  0xfb   :  { %198 = vst [vmem:[%s342_s3] sm:$0xff] %v193_v25 }

// kernel: vae_forward.9
= control target key start
LH: loop header
LB: loop body
LE: loop exit
PB: predicated region body
PF: predicated region fallthrough
CT: control target
= control target key end

     0   :  { %v771_v1 = vmov 0.0   ;;  %vm772_vm0 = vmmov 0   ;;  %v773_v32 = vmov 0.0|0.0   ;;  %s953_s1 = inlined_call_operand.vmem [shape: bf16[384,128], index: 1, kind: input, shape index: {}]   ;;  %s954_s0 = inlined_call_operand.vmem [shape: bf16[8,384], index: 0, kind: input, shape index: {}]   ;;  %s955_s4 = inlined_call_operand.vmem [shape: f32[128,128], index: 4, kind: input, shape index: {}]   ;;  %s956_s2 = inlined_call_operand.vmem [shape: f32[1,128], index: 2, kind: input, shape index: {}]   ;;  %s957_s3 = inlined_call_operand.vmem [shape: f32[1,128], index: 3, kind: input, shape index: {}]   ;;  %s958_s5 = inlined_call_operand.vmem [shape: bf16[8,128], index: 5, kind: output, shape index: {}]  }
   0x1   :  { %v742_v0 = vld [vmem:[%s953_s1 + $0x40] sm:$0xff]   ;;  %601 = vmatprep.subr.bf16.mxu1 %v771_v1  ;;  %617 = vmatprep.mubr.msk.bf16.mxu1 %vm772_vm0, %v771_v1  ;;  %v745_v4 = vld [vmem:[%s953_s1 + $0x48] sm:$0xff]   ;;  %v748_v7 = vld [vmem:[%s953_s1 + $0x50] sm:$0xff]  }
   0x2   :  { %v743_v2 = vld [vmem:[%s953_s1] sm:$0xff]   ;;  %536 = vmatprep.subr.bf16.mxu0 %v742_v0  ;;  %v746_v5 = vld [vmem:[%s953_s1 + $0x8] sm:$0xff]   ;;  %v749_v8 = vld [vmem:[%s953_s1 + $0x10] sm:$0xff]  }
   0x3   :  { %v744_v3 = vld [vmem:[%s953_s1 + $0x80] sm:$0xff]   ;;  %537 = vmatpush3.bf16.msra.mxu0 %v743_v2  ;;  %v747_v6 = vld [vmem:[%s953_s1 + $0x88] sm:$0xff]   ;;  %v750_v9 = vld [vmem:[%s953_s1 + $0x90] sm:$0xff]  }
   0x4   :  { %602 = vmatpush3.bf16.msra.mxu1 %v744_v3  ;;  %538 = vmatprep.subr.bf16.mxu0 %v745_v4  ;;  %v751_v10 = vld [vmem:[%s953_s1 + $0x58] sm:$0xff]   ;;  %v754_v13 = vld [vmem:[%s953_s1 + $0x60] sm:$0xff]   ;;  %v757_v16 = vld [vmem:[%s953_s1 + $0x68] sm:$0xff]  }
   0x5   :  { %603 = vmatprep.subr.bf16.mxu1 %v771_v1  ;;  %v752_v11 = vld [vmem:[%s953_s1 + $0x18] sm:$0xff]   ;;  %v755_v14 = vld [vmem:[%s953_s1 + $0x20] sm:$0xff]   ;;  %v758_v17 = vld [vmem:[%s953_s1 + $0x28] sm:$0xff]  }
   0x6   :  { %v753_v12 = vld [vmem:[%s953_s1 + $0x98] sm:$0xff]   ;;  %v756_v15 = vld [vmem:[%s953_s1 + $0xa0] sm:$0xff]   ;;  %v759_v18 = vld [vmem:[%s953_s1 + $0xa8] sm:$0xff]  }
   0x7   :  { %539 = vmatpush3.bf16.msra.mxu0 %v746_v5  ;;  %v760_v19 = vld [vmem:[%s953_s1 + $0x70] sm:$0xff]   ;;  %v763_v22 = vld [vmem:[%s953_s1 + $0x78] sm:$0xff]   ;;  %v21_v23 = vld [vmem:[%s954_s0] sm:$0xff] }
   0x8   :  { %604 = vmatpush3.bf16.msra.mxu1 %v747_v6  ;;  %540 = vmatprep.subr.bf16.mxu0 %v748_v7  ;;  %v761_v20 = vld [vmem:[%s953_s1 + $0x30] sm:$0xff]   ;;  %v509_v24 = vcombine.high %v21_v23, %v21_v23  ;;  %v764_v25 = vld [vmem:[%s953_s1 + $0x38] sm:$0xff]   ;;  %v319_v27 = vld [vmem:[%s955_s4] sm:$0xff]  ;;  %v508_v29 = vcombine.low %v21_v23, %v21_v23 }
   0x9   :  { %605 = vmatprep.subr.bf16.mxu1 %v771_v1  ;;  %v762_v21 = vld [vmem:[%s953_s1 + $0xb0] sm:$0xff]   ;;  %v765_v26 = vld [vmem:[%s953_s1 + $0xb8] sm:$0xff]   ;;  %v320_v28 = vld [vmem:[%s955_s4 + $0x8] sm:$0xff] }
   0xa   :  { %258 = vmatprep.mubr.bf16.mxu0 %v509_v24  ;;  %v768_v30 = vld [vmem:[%s954_s0 + $0x8] ss:$0 sps:$4 sm:$0xff]   ;;  %v692_v31 = vpack.c.bf16 %v320_v28, %v319_v27  ;;  %v321_v33 = vld [vmem:[%s955_s4 + $0x10] sm:$0xff]  ;;  %v322_v34 = vld [vmem:[%s955_s4 + $0x18] sm:$0xff] }
   0xb   :  { %541 = vmatpush3.bf16.msra.mxu0 %v749_v8  ;;  %v695_v35 = vpack.c.bf16 %v322_v34, %v321_v33  ;;  %v323_v36 = vld [vmem:[%s955_s4 + $0x20] sm:$0xff]  ;;  %v324_v37 = vld [vmem:[%s955_s4 + $0x28] sm:$0xff]  ;;  %v325_v39 = vld [vmem:[%s955_s4 + $0x30] sm:$0xff] }
   0xc   :  { %606 = vmatpush3.bf16.msra.mxu1 %v750_v9  ;;  %542 = vmatprep.subr.bf16.mxu0 %v751_v10  ;;  %v698_v38 = vpack.c.bf16 %v324_v37, %v323_v36  ;;  %v326_v40 = vld [vmem:[%s955_s4 + $0x38] sm:$0xff]  ;;  %v327_v42 = vld [vmem:[%s955_s4 + $0x40] sm:$0xff]  ;;  %v328_v43 = vld [vmem:[%s955_s4 + $0x48] sm:$0xff] }
   0xd   :  { %607 = vmatprep.subr.bf16.mxu1 %v771_v1  ;;  %v701_v41 = vpack.c.bf16 %v326_v40, %v325_v39  ;;  %v704_v44 = vpack.c.bf16 %v328_v43, %v327_v42  ;;  %v329_v45 = vld [vmem:[%s955_s4 + $0x50] sm:$0xff]  ;;  %v330_v46 = vld [vmem:[%s955_s4 + $0x58] sm:$0xff]  ;;  %v331_v48 = vld [vmem:[%s955_s4 + $0x60] sm:$0xff] }
   0xe   :  { %v707_v47 = vpack.c.bf16 %v330_v46, %v329_v45  ;;  %v332_v49 = vld [vmem:[%s955_s4 + $0x68] sm:$0xff]  ;;  %v333_v51 = vld [vmem:[%s955_s4 + $0x70] sm:$0xff]  ;;  %v334_v52 = vld [vmem:[%s955_s4 + $0x78] sm:$0xff] }
   0xf   :  { %543 = vmatpush3.bf16.msra.mxu0 %v752_v11  ;;  %v710_v50 = vpack.c.bf16 %v332_v49, %v331_v48  ;;  %v713_v53 = vpack.c.bf16 %v334_v52, %v333_v51  ;;  %v477_v23 = vld [vmem:[%s956_s2] sm:$0x1] }
  0x10   :  { %608 = vmatpush3.bf16.msra.mxu1 %v753_v12  ;;  %544 = vmatprep.subr.bf16.mxu0 %v754_v13 }
  0x11   :  { %609 = vmatprep.subr.bf16.mxu1 %v771_v1 }
  0x13   :  { %545 = vmatpush3.bf16.msra.mxu0 %v755_v14 }
  0x14   :  { %610 = vmatpush3.bf16.msra.mxu1 %v756_v15  ;;  %546 = vmatprep.subr.bf16.mxu0 %v757_v16 }
  0x15   :  { %611 = vmatprep.subr.bf16.mxu1 %v771_v1 }
  0x17   :  { %547 = vmatpush3.bf16.msra.mxu0 %v758_v17 }
  0x18   :  { %612 = vmatpush3.bf16.msra.mxu1 %v759_v18  ;;  %548 = vmatprep.subr.bf16.mxu0 %v760_v19  ;;  %v481_v19 = vlaneseq }
  0x19   :  { %613 = vmatprep.subr.bf16.mxu1 %v771_v1 }
  0x1b   :  { %549 = vmatpush3.bf16.msra.mxu0 %v761_v20 }
  0x1c   :  { %614 = vmatpush3.bf16.msra.mxu1 %v762_v21  ;;  %550 = vmatprep.subr.bf16.mxu0 %v763_v22  ;;  %v482_v21 = vshrl.u32 %v481_v19, 7 }
  0x1d   :  { %615 = vmatprep.subr.bf16.mxu1 %v771_v1 }
  0x1e   :  { %v483_v22 = vsub.s32 0, %v482_v21 }
  0x1f   :  { %551 = vmatpush3.bf16.msra.mxu0 %v764_v25 }
  0x20   :  { %616 = vmatpush3.bf16.msra.mxu1 %v765_v26  ;;  %691 = vmatprep.subr.bf16.mxu0 %v773_v32 }
  0x21   :  { %715 = vmatprep.subr.bf16.mxu1 %v773_v32 }
  0x22   :  { %259 = vmatmul.mubr.bf16.vlgmr.msra.gmra.mrb[0].mxu0 %v508_v29  ;;  %v535_v29 = vld [vmem:[%s957_s3] ss:$0 sm:$0xff] }
  0x23   :  { %618 = vmatmul.mubr.bf16.vlgmr.msra.gmra.mrb[0].mxu1 %v768_v30  ;;  %693 = vmatpush3.bf16.msra.mxu0 %v692_v31 }
  0x24   :  { %717 = vmatpush3.bf16.msra.mxu1 %v692_v31  ;;  %694 = vmatprep.subr.bf16.mxu0 %v773_v32 }
  0x25   :  { %718 = vmatprep.subr.bf16.mxu1 %v773_v32  ;;  %653 = vmatprep.mubr.msk.f32.mxu0 %vm772_vm0, %v771_v1 }
  0x26   :  { %688 = vmatprep.mubr.msk.f32.mxu1 %vm772_vm0, %v771_v1 }
  0x27   :  { %696 = vmatpush3.bf16.msra.mxu0 %v695_v35 }
  0x28   :  { %720 = vmatpush3.bf16.msra.mxu1 %v695_v35  ;;  %697 = vmatprep.subr.bf16.mxu0 %v773_v32 }
  0x29   :  { %721 = vmatprep.subr.bf16.mxu1 %v773_v32 }
  0x2b   :  { %699 = vmatpush3.bf16.msra.mxu0 %v698_v38 }
  0x2c   :  { %723 = vmatpush3.bf16.msra.mxu1 %v698_v38  ;;  %700 = vmatprep.subr.bf16.mxu0 %v773_v32 }
  0x2d   :  { %724 = vmatprep.subr.bf16.mxu1 %v773_v32 }
  0x2f   :  { %702 = vmatpush3.bf16.msra.mxu0 %v701_v41 }
  0x30   :  { %726 = vmatpush3.bf16.msra.mxu1 %v701_v41  ;;  %703 = vmatprep.subr.bf16.mxu0 %v773_v32 }
  0x31   :  { %727 = vmatprep.subr.bf16.mxu1 %v773_v32 }
  0x33   :  { %705 = vmatpush3.bf16.msra.mxu0 %v704_v44 }
  0x34   :  { %729 = vmatpush3.bf16.msra.mxu1 %v704_v44  ;;  %706 = vmatprep.subr.bf16.mxu0 %v773_v32 }
  0x35   :  { %730 = vmatprep.subr.bf16.mxu1 %v773_v32 }
  0x37   :  { %708 = vmatpush3.bf16.msra.mxu0 %v707_v47 }
  0x38   :  { %732 = vmatpush3.bf16.msra.mxu1 %v707_v47  ;;  %709 = vmatprep.subr.bf16.mxu0 %v773_v32 }
  0x39   :  { %733 = vmatprep.subr.bf16.mxu1 %v773_v32 }
  0x3b   :  { %711 = vmatpush3.bf16.msra.mxu0 %v710_v50 }
  0x3c   :  { %735 = vmatpush3.bf16.msra.mxu1 %v710_v50  ;;  %712 = vmatprep.subr.bf16.mxu0 %v773_v32 }
  0x3d   :  { %736 = vmatprep.subr.bf16.mxu1 %v773_v32 }
  0x3f   :  { %714 = vmatpush3.bf16.msra.mxu0 %v713_v53 }
  0x40   :  { %738 = vmatpush3.bf16.msra.mxu1 %v713_v53 }
  0xf5   :  { %v552_v54 = vpop.f32.mrb[0].mxu0 }
  0xf6   :  { %v300_v55 = vpop.f32.mrb[0].mxu1  ;;  %v553_v56 = vpop.f32.mrb[1].mxu0 }
  0xf7   :  { %v554_v57 = vadd.f32 %v553_v56, %v552_v54  ;;  %v619_v58 = vpop.f32.mrb[1].mxu1  ;;  %v555_v59 = vpop.f32.mrb[2].mxu0 }
  0xf8   :  { %v303_v60 = vpop.f32.mrb[2].mxu1  ;;  %v556_v61 = vpop.f32.mrb[3].mxu0 }
  0xf9   :  { %v301_v62 = vadd.f32 %v554_v57, %v300_v55  ;;  %v620_v63 = vpop.f32.mrb[3].mxu1 }
  0xfb   :  { %v306_v0 = vrot.slane %v301_v62, 4  ;;  %v312_v1 = vmul.f32 %v301_v62, %v301_v62 }
  0xfd   :  { %v307_v2 = vadd.f32 %v306_v0, %v301_v62  ;;  %v313_v3 = vrot.slane %v312_v1, 4 }
  0xff   :  { %v308_v4 = vrot.slane %v307_v2, 2  ;;  %v314_v5 = vadd.f32 %v313_v3, %v312_v1 }
 0x101   :  { %v309_v6 = vadd.f32 %v308_v4, %v307_v2  ;;  %v315_v7 = vrot.slane %v314_v5, 2 }
 0x103   :  { %v310_v8 = vrot.slane %v309_v6, 1  ;;  %v316_v9 = vadd.f32 %v315_v7, %v314_v5 }
 0x105   :  { %v311_v10 = vadd.f32 %v310_v8, %v309_v6  ;;  %v317_v11 = vrot.slane %v316_v9, 1 }
 0x107   :  { %654 = vmatmul.mubr.f32.vlgmr.msra.gmra.mrb[4].mxu0 %v311_v10  ;;  %v318_v12 = vadd.f32 %v317_v11, %v316_v9 }
 0x109   :  { %689 = vmatmul.mubr.f32.vlgmr.msra.gmra.mrb[4].mxu1 %v318_v12 }
 0x1da   :  { %v401_v13 = vpop.f32.mrb[4].mxu0 }
 0x1db   :  { %v475_v14 = vmul.f32 %v401_v13, %v401_v13  ;;  %v655_v15 = vpop.f32.mrb[5].mxu0  ;;  %v484_v24 = vrot.slane %v401_v13, %v483_v22 }
 0x1dc   :  { %v471_v16 = vpop.f32.mrb[4].mxu1 }
 0x1dd   :  { %v476_v17 = vsub.f32 %v471_v16, %v475_v14  ;;  %v690_v18 = vpop.f32.mrb[5].mxu1  ;;  %v485_v27 = vsub.f32 %v301_v62, %v484_v24 }
 0x1df   :  { %v478_v20 = vadd.f32 1e-05, %v476_v17 }
 0x1e1   :  { %769 = vrsqrt.f32 %v478_v20 }
 0x1eb   :  { %v770_v25 = vpop.eup %769 }
 0x1ec   :  { %v480_v26 = vmul.f32 %v770_v25, %v477_v23 }
 0x1ee   :  { %v490_v28 = vrot.slane %v480_v26, %v483_v22 }
 0x1f0   :  { %v492_v30 = vmul.f32 %v490_v28, %v485_v27 }
 0x1f2   :  { %v500_v31 = vadd.f32 %v535_v29, %v492_v30 }
 0x1f4   :  { %v501_v32 = vmax.f32 %v500_v31, 0.0 }
 0x1f6   :  { %v502_v33 = vpack.c.bf16 %v501_v32, %v501_v32 }
 0x1f8   :  { %503 = vst [vmem:[%s958_s5] sm:$0xf] %v502_v33 }

// kernel: vae_forward.10
= control target key start
LH: loop header
LB: loop body
LE: loop exit
PB: predicated region body
PF: predicated region fallthrough
CT: control target
= control target key end

     0   :  { %v710_v1 = vmov 0.0|0.0   ;;  %vm711_vm0 = vmmov 0   ;;  %v712_v45 = vmov 0.0   ;;  %s879_s1 = inlined_call_operand.vmem [shape: bf16[256,128], index: 1, kind: input, shape index: {}]   ;;  %s880_s0 = inlined_call_operand.vmem [shape: bf16[32,256], index: 0, kind: input, shape index: {}]   ;;  %s881_s4 = inlined_call_operand.vmem [shape: f32[128,128], index: 4, kind: input, shape index: {}]   ;;  %s882_s2 = inlined_call_operand.vmem [shape: f32[1,128], index: 2, kind: input, shape index: {}]   ;;  %s883_s3 = inlined_call_operand.vmem [shape: f32[1,128], index: 3, kind: input, shape index: {}]   ;;  %s884_s5 = inlined_call_operand.vmem [shape: bf16[32,128], index: 5, kind: output, shape index: {}]  }
   0x1   :  { %v686_v0 = vld [vmem:[%s879_s1 + $0x40] sm:$0xff]   ;;  %635 = vmatprep.subr.bf16.mxu1 %v710_v1  ;;  %v688_v3 = vld [vmem:[%s879_s1 + $0x48] sm:$0xff]   ;;  %v690_v5 = vld [vmem:[%s879_s1 + $0x50] sm:$0xff]   ;;  %597 = vmatprep.mubr.msk.f32.mxu1 %vm711_vm0, %v712_v45 }
   0x2   :  { %v687_v2 = vld [vmem:[%s879_s1] sm:$0xff]   ;;  %503 = vmatprep.subr.bf16.mxu0 %v686_v0  ;;  %v689_v4 = vld [vmem:[%s879_s1 + $0x8] sm:$0xff]   ;;  %v691_v6 = vld [vmem:[%s879_s1 + $0x10] sm:$0xff]  }
   0x3   :  { %504 = vmatpush3.bf16.msra.mxu0 %v687_v2  ;;  %v692_v7 = vld [vmem:[%s879_s1 + $0x58] sm:$0xff]   ;;  %v694_v9 = vld [vmem:[%s879_s1 + $0x60] sm:$0xff]   ;;  %v696_v11 = vld [vmem:[%s879_s1 + $0x68] sm:$0xff]  }
   0x4   :  { %505 = vmatprep.subr.bf16.mxu0 %v688_v3  ;;  %v693_v8 = vld [vmem:[%s879_s1 + $0x18] sm:$0xff]   ;;  %v695_v10 = vld [vmem:[%s879_s1 + $0x20] sm:$0xff]   ;;  %v697_v14 = vld [vmem:[%s879_s1 + $0x28] sm:$0xff]  }
   0x5   :  { %v704_v12 = vld [vmem:[%s880_s0 + $0x4] ss:$8 sps:$4 sm:$0xff]   ;;  %v698_v16 = vld [vmem:[%s879_s1 + $0x70] sm:$0xff]   ;;  %v700_v19 = vld [vmem:[%s879_s1 + $0x78] sm:$0xff]  }
   0x6   :  { %v244_v13 = vld [vmem:[%s881_s4] sm:$0xff]  ;;  %205 = vmatprep.mubr.bf16.mxu0 %v704_v12  ;;  %v245_v15 = vld [vmem:[%s881_s4 + $0x8] sm:$0xff]  ;;  %v699_v18 = vld [vmem:[%s879_s1 + $0x30] sm:$0xff]  }
   0x7   :  { %506 = vmatpush3.bf16.msra.mxu0 %v689_v4  ;;  %v636_v17 = vpack.c.bf16 %v245_v15, %v244_v13  ;;  %v701_v20 = vld [vmem:[%s879_s1 + $0x38] sm:$0xff]   ;;  %v702_v21 = vld [vmem:[%s880_s0] ss:$8 sps:$4 sm:$0xff]   ;;  %v246_v24 = vld [vmem:[%s881_s4 + $0x10] sm:$0xff] }
   0x8   :  { %507 = vmatprep.subr.bf16.mxu0 %v690_v5  ;;  %v705_v22 = vld [vmem:[%s880_s0 + $0x14] ss:$8 sps:$4 sm:$0xff]   ;;  %v707_v23 = vld [vmem:[%s880_s0 + $0x10] ss:$8 sps:$4 sm:$0xff]   ;;  %v248_v27 = vld [vmem:[%s881_s4 + $0x20] sm:$0xff] }
   0x9   :  { %637 = vmatpush3.bf16.msra.mxu1 %v636_v17  ;;  %v247_v25 = vld [vmem:[%s881_s4 + $0x18] sm:$0xff]  ;;  %v249_v28 = vld [vmem:[%s881_s4 + $0x28] sm:$0xff]  ;;  %v250_v30 = vld [vmem:[%s881_s4 + $0x30] sm:$0xff] }
   0xa   :  { %638 = vmatprep.subr.bf16.mxu1 %v710_v1  ;;  %v639_v26 = vpack.c.bf16 %v247_v25, %v246_v24  ;;  %v642_v29 = vpack.c.bf16 %v249_v28, %v248_v27  ;;  %v251_v31 = vld [vmem:[%s881_s4 + $0x38] sm:$0xff]  ;;  %v252_v33 = vld [vmem:[%s881_s4 + $0x40] sm:$0xff]  ;;  %v253_v34 = vld [vmem:[%s881_s4 + $0x48] sm:$0xff] }
   0xb   :  { %508 = vmatpush3.bf16.msra.mxu0 %v691_v6  ;;  %v645_v32 = vpack.c.bf16 %v251_v31, %v250_v30  ;;  %v648_v35 = vpack.c.bf16 %v253_v34, %v252_v33  ;;  %v254_v36 = vld [vmem:[%s881_s4 + $0x50] sm:$0xff]  ;;  %v255_v37 = vld [vmem:[%s881_s4 + $0x58] sm:$0xff]  ;;  %v256_v39 = vld [vmem:[%s881_s4 + $0x60] sm:$0xff] }
   0xc   :  { %509 = vmatprep.subr.bf16.mxu0 %v692_v7  ;;  %v651_v38 = vpack.c.bf16 %v255_v37, %v254_v36  ;;  %v257_v40 = vld [vmem:[%s881_s4 + $0x68] sm:$0xff]  ;;  %v258_v42 = vld [vmem:[%s881_s4 + $0x70] sm:$0xff]  ;;  %v259_v43 = vld [vmem:[%s881_s4 + $0x78] sm:$0xff] }
   0xd   :  { %640 = vmatpush3.bf16.msra.mxu1 %v639_v26  ;;  %v654_v41 = vpack.c.bf16 %v257_v40, %v256_v39  ;;  %v657_v44 = vpack.c.bf16 %v259_v43, %v258_v42  ;;  %v402_v27 = vld [vmem:[%s882_s2] sm:$0x1] }
   0xe   :  { %641 = vmatprep.subr.bf16.mxu1 %v710_v1 }
   0xf   :  { %510 = vmatpush3.bf16.msra.mxu0 %v693_v8 }
  0x10   :  { %511 = vmatprep.subr.bf16.mxu0 %v694_v9 }
  0x11   :  { %643 = vmatpush3.bf16.msra.mxu1 %v642_v29 }
  0x12   :  { %644 = vmatprep.subr.bf16.mxu1 %v710_v1 }
  0x13   :  { %512 = vmatpush3.bf16.msra.mxu0 %v695_v10 }
  0x14   :  { %513 = vmatprep.subr.bf16.mxu0 %v696_v11 }
  0x15   :  { %646 = vmatpush3.bf16.msra.mxu1 %v645_v32 }
  0x16   :  { %647 = vmatprep.subr.bf16.mxu1 %v710_v1 }
  0x17   :  { %514 = vmatpush3.bf16.msra.mxu0 %v697_v14 }
  0x18   :  { %515 = vmatprep.subr.bf16.mxu0 %v698_v16 }
  0x19   :  { %649 = vmatpush3.bf16.msra.mxu1 %v648_v35 }
  0x1a   :  { %650 = vmatprep.subr.bf16.mxu1 %v710_v1 }
  0x1b   :  { %516 = vmatpush3.bf16.msra.mxu0 %v699_v18 }
  0x1c   :  { %517 = vmatprep.subr.bf16.mxu0 %v700_v19 }
  0x1d   :  { %652 = vmatpush3.bf16.msra.mxu1 %v651_v38 }
  0x1e   :  { %653 = vmatprep.subr.bf16.mxu1 %v710_v1 }
  0x1f   :  { %518 = vmatpush3.bf16.msra.mxu0 %v701_v20 }
  0x20   :  { %659 = vmatprep.subr.bf16.mxu0 %v710_v1 }
  0x21   :  { %655 = vmatpush3.bf16.msra.mxu1 %v654_v41 }
  0x22   :  { %206 = vmatmul.mubr.bf16.vlgmr.msra.gmra.mrb[0].mxu0 %v702_v21  ;;  %656 = vmatprep.subr.bf16.mxu1 %v710_v1  ;;  %v406_v21 = vlaneseq }
  0x23   :  { %213 = vmatprep.mubr.bf16.mxu0 %v705_v22  ;;  %661 = vmatpush3.bf16.msra.mxu0 %v636_v17 }
  0x24   :  { %662 = vmatprep.subr.bf16.mxu0 %v710_v1  ;;  %v407_v24 = vshrl.u32 %v406_v21, 7 }
  0x25   :  { %658 = vmatpush3.bf16.msra.mxu1 %v657_v44 }
  0x26   :  { %v408_v25 = vsub.s32 0, %v407_v24 }
  0x27   :  { %664 = vmatpush3.bf16.msra.mxu0 %v639_v26 }
  0x28   :  { %665 = vmatprep.subr.bf16.mxu0 %v710_v1 }
  0x2a   :  { %214 = vmatmul.mubr.bf16.gmra.mrb[4].mxu0 %v707_v23 }
  0x2b   :  { %667 = vmatpush3.bf16.msra.mxu0 %v642_v29  ;;  %632 = vmatprep.mubr.msk.f32.mxu0 %vm711_vm0, %v712_v45 }
  0x2c   :  { %668 = vmatprep.subr.bf16.mxu0 %v710_v1 }
  0x2f   :  { %670 = vmatpush3.bf16.msra.mxu0 %v645_v32 }
  0x30   :  { %671 = vmatprep.subr.bf16.mxu0 %v710_v1 }
  0x33   :  { %673 = vmatpush3.bf16.msra.mxu0 %v648_v35  ;;  %v483_v35 = vld [vmem:[%s883_s3] ss:$0 sm:$0xff] }
  0x34   :  { %674 = vmatprep.subr.bf16.mxu0 %v710_v1 }
  0x37   :  { %676 = vmatpush3.bf16.msra.mxu0 %v651_v38 }
  0x38   :  { %677 = vmatprep.subr.bf16.mxu0 %v710_v1 }
  0x3b   :  { %679 = vmatpush3.bf16.msra.mxu0 %v654_v41 }
  0x3c   :  { %680 = vmatprep.subr.bf16.mxu0 %v710_v1 }
  0x3f   :  { %682 = vmatpush3.bf16.msra.mxu0 %v657_v44 }
  0xf5   :  { %v519_v46 = vpop.f32.mrb[0].mxu0 }
  0xf6   :  { %v520_v47 = vpop.f32.mrb[1].mxu0 }
  0xf7   :  { %v521_v48 = vadd.f32 %v520_v47, %v519_v46  ;;  %v522_v49 = vpop.f32.mrb[2].mxu0 }
  0xf8   :  { %v523_v50 = vpop.f32.mrb[3].mxu0 }
  0xf9   :  { %v524_v51 = vadd.f32 %v523_v50, %v522_v49  ;;  %v231_v55 = vmul.f32 %v521_v48, %v521_v48 }
  0xfb   :  { %v232_v52 = vmul.f32 %v524_v51, %v524_v51  ;;  %v222_v56 = vadd.f32 %v524_v51, %v521_v48 }
  0xfd   :  { %v525_v53 = vpop.f32.mrb[4].mxu0  ;;  %v235_v60 = vadd.f32 %v232_v52, %v231_v55 }
  0xfe   :  { %v526_v54 = vpop.f32.mrb[5].mxu0 }
  0xff   :  { %v527_v57 = vadd.f32 %v526_v54, %v525_v53  ;;  %v528_v58 = vpop.f32.mrb[6].mxu0 }
 0x100   :  { %v529_v59 = vpop.f32.mrb[7].mxu0 }
 0x101   :  { %v223_v61 = vadd.f32 %v527_v57, %v222_v56  ;;  %v233_v62 = vmul.f32 %v527_v57, %v527_v57  ;;  %v530_v63 = vadd.f32 %v529_v59, %v528_v58 }
 0x103   :  { %v236_v0 = vadd.f32 %v235_v60, %v233_v62  ;;  %v224_v1 = vadd.f32 %v530_v63, %v223_v61  ;;  %v234_v2 = vmul.f32 %v530_v63, %v530_v63 }
 0x105   :  { %v225_v3 = vrot.slane %v224_v1, 4  ;;  %v237_v4 = vadd.f32 %v236_v0, %v234_v2 }
 0x107   :  { %v226_v5 = vadd.f32 %v225_v3, %v224_v1  ;;  %v238_v6 = vrot.slane %v237_v4, 4 }
 0x109   :  { %v239_v7 = vadd.f32 %v238_v6, %v237_v4  ;;  %v227_v8 = vrot.slane %v226_v5, 2 }
 0x10b   :  { %v240_v9 = vrot.slane %v239_v7, 2  ;;  %v228_v10 = vadd.f32 %v227_v8, %v226_v5 }
 0x10d   :  { %v241_v11 = vadd.f32 %v240_v9, %v239_v7  ;;  %v229_v12 = vrot.slane %v228_v10, 1 }
 0x10f   :  { %v242_v13 = vrot.slane %v241_v11, 1  ;;  %v230_v14 = vadd.f32 %v229_v12, %v228_v10 }
 0x111   :  { %598 = vmatmul.mubr.f32.vlgmr.msra.gmra.mrb[0].mxu1 %v230_v14  ;;  %v243_v15 = vadd.f32 %v242_v13, %v241_v11 }
 0x113   :  { %633 = vmatmul.mubr.f32.vlgmr.msra.gmra.mrb[8].mxu0 %v243_v15 }
 0x1e4   :  { %v326_v16 = vpop.f32.mrb[0].mxu1 }
 0x1e5   :  { %v400_v17 = vmul.f32 %v326_v16, %v326_v16  ;;  %v599_v18 = vpop.f32.mrb[1].mxu1  ;;  %v409_v26 = vrot.slane %v326_v16, %v408_v25 }
 0x1e6   :  { %v396_v19 = vpop.f32.mrb[8].mxu0 }
 0x1e7   :  { %v634_v20 = vpop.f32.mrb[9].mxu0  ;;  %v401_v22 = vsub.f32 %v396_v19, %v400_v17  ;;  %v410_v30 = vsub.f32 %v521_v48, %v409_v26  ;;  %v411_v31 = vsub.f32 %v524_v51, %v409_v26  ;;  %v412_v32 = vsub.f32 %v527_v57, %v409_v26 }
 0x1e8   :  { %v413_v33 = vsub.f32 %v530_v63, %v409_v26 }
 0x1e9   :  { %v403_v23 = vadd.f32 1e-05, %v401_v22 }
 0x1eb   :  { %708 = vrsqrt.f32 %v403_v23 }
 0x1f5   :  { %v709_v28 = vpop.eup %708 }
 0x1f6   :  { %v405_v29 = vmul.f32 %v709_v28, %v402_v27 }
 0x1f8   :  { %v418_v34 = vrot.slane %v405_v29, %v408_v25 }
 0x1fa   :  { %v420_v36 = vmul.f32 %v418_v34, %v410_v30  ;;  %v421_v37 = vmul.f32 %v418_v34, %v411_v31  ;;  %v422_v38 = vmul.f32 %v418_v34, %v412_v32  ;;  %v423_v39 = vmul.f32 %v418_v34, %v413_v33 }
 0x1fc   :  { %v431_v40 = vadd.f32 %v483_v35, %v420_v36  ;;  %v432_v41 = vadd.f32 %v483_v35, %v421_v37  ;;  %v433_v42 = vadd.f32 %v483_v35, %v422_v38  ;;  %v434_v43 = vadd.f32 %v483_v35, %v423_v39 }
 0x1fe   :  { %v435_v44 = vmax.f32 %v431_v40, 0.0  ;;  %v436_v45 = vmax.f32 %v432_v41, 0.0  ;;  %v437_v46 = vmax.f32 %v433_v42, 0.0  ;;  %v438_v47 = vmax.f32 %v434_v43, 0.0 }
 0x200   :  { %v495_v48 = vpack.c.bf16 %v436_v45, %v435_v44  ;;  %v500_v49 = vpack.c.bf16 %v438_v47, %v437_v46 }
 0x202   :  { %496 = vst [vmem:[%s884_s5] sm:$0xff] %v495_v48   ;;  %502 = vst [vmem:[%s884_s5 + $0x8] sm:$0xff] %v500_v49  }

// kernel: vae_forward.11
= control target key start
LH: loop header
LB: loop body
LE: loop exit
PB: predicated region body
PF: predicated region fallthrough
CT: control target
= control target key end

     0   :  { %s677_s1 = inlined_call_operand.vmem [shape: bf16[128,128], index: 1, kind: input, shape index: {}]   ;;  %s678_s0 = inlined_call_operand.vmem [shape: bf16[128,128], index: 0, kind: input, shape index: {}]   ;;  %s679_s2 = inlined_call_operand.vmem [shape: f32[1,128], index: 2, kind: input, shape index: {}]   ;;  %s680_s3 = inlined_call_operand.vmem [shape: f32[128,128], index: 3, kind: output, shape index: {}]  }
   0x1   :  { %v460_v0 = vld [vmem:[%s677_s1] sm:$0xff]   ;;  %v461_v1 = vld [vmem:[%s677_s1 + $0x8] sm:$0xff]   ;;  %v462_v2 = vld [vmem:[%s677_s1 + $0x10] sm:$0xff]  }
   0x2   :  { %412 = vmatprep.subr.bf16.mxu0 %v460_v0  ;;  %444 = vmatprep.subr.bf16.mxu1 %v460_v0  ;;  %v463_v3 = vld [vmem:[%s677_s1 + $0x18] sm:$0xff]   ;;  %v468_v4 = vld [vmem:[%s678_s0] sm:$0xff]   ;;  %v465_v7 = vld [vmem:[%s677_s1 + $0x28] sm:$0xff]  }
   0x3   :  { %413 = vmatpush3.bf16.msra.mxu0 %v460_v0  ;;  %452 = vmatpush3.bf16.msra.mxu1 %v460_v0  ;;  %v469_v5 = vld [vmem:[%s678_s0 + $0x20] sm:$0xff]   ;;  %v466_v8 = vld [vmem:[%s677_s1 + $0x30] sm:$0xff]   ;;  %v467_v9 = vld [vmem:[%s677_s1 + $0x38] sm:$0xff]  }
   0x4   :  { %414 = vmatprep.subr.bf16.mxu0 %v461_v1  ;;  %445 = vmatprep.subr.bf16.mxu1 %v461_v1  ;;  %v464_v6 = vld [vmem:[%s677_s1 + $0x20] sm:$0xff]   ;;  %v470_v10 = vld [vmem:[%s678_s0 + $0x8] sm:$0xff]   ;;  %v472_v12 = vld [vmem:[%s678_s0 + $0x10] sm:$0xff]  }
   0x5   :  { %428 = vmatprep.mubr.bf16.mxu0 %v468_v4  ;;  %436 = vmatprep.mubr.bf16.mxu1 %v469_v5  ;;  %v471_v11 = vld [vmem:[%s678_s0 + $0x28] sm:$0xff]   ;;  %v473_v13 = vld [vmem:[%s678_s0 + $0x30] sm:$0xff]   ;;  %v474_v14 = vld [vmem:[%s678_s0 + $0x18] sm:$0xff]  }
   0x6   :  { %v475_v15 = vld [vmem:[%s678_s0 + $0x38] sm:$0xff]   ;;  %v611_v16 = vld [vmem:[%s679_s2] ss:$0 sm:$0xff] }
   0x7   :  { %415 = vmatpush3.bf16.msra.mxu0 %v461_v1  ;;  %453 = vmatpush3.bf16.msra.mxu1 %v461_v1 }
   0x8   :  { %416 = vmatprep.subr.bf16.mxu0 %v462_v2  ;;  %446 = vmatprep.subr.bf16.mxu1 %v462_v2 }
   0xb   :  { %417 = vmatpush3.bf16.msra.mxu0 %v462_v2  ;;  %454 = vmatpush3.bf16.msra.mxu1 %v462_v2 }
   0xc   :  { %418 = vmatprep.subr.bf16.mxu0 %v463_v3  ;;  %447 = vmatprep.subr.bf16.mxu1 %v463_v3 }
   0xf   :  { %419 = vmatpush3.bf16.msra.mxu0 %v463_v3  ;;  %455 = vmatpush3.bf16.msra.mxu1 %v463_v3 }
  0x10   :  { %420 = vmatprep.subr.bf16.mxu0 %v464_v6  ;;  %448 = vmatprep.subr.bf16.mxu1 %v464_v6 }
  0x13   :  { %421 = vmatpush3.bf16.msra.mxu0 %v464_v6  ;;  %456 = vmatpush3.bf16.msra.mxu1 %v464_v6 }
  0x14   :  { %422 = vmatprep.subr.bf16.mxu0 %v465_v7  ;;  %449 = vmatprep.subr.bf16.mxu1 %v465_v7 }
  0x17   :  { %423 = vmatpush3.bf16.msra.mxu0 %v465_v7  ;;  %457 = vmatpush3.bf16.msra.mxu1 %v465_v7 }
  0x18   :  { %424 = vmatprep.subr.bf16.mxu0 %v466_v8  ;;  %450 = vmatprep.subr.bf16.mxu1 %v466_v8 }
  0x1b   :  { %425 = vmatpush3.bf16.msra.mxu0 %v466_v8  ;;  %458 = vmatpush3.bf16.msra.mxu1 %v466_v8 }
  0x1c   :  { %426 = vmatprep.subr.bf16.mxu0 %v467_v9  ;;  %451 = vmatprep.subr.bf16.mxu1 %v467_v9 }
  0x1f   :  { %427 = vmatpush3.bf16.msra.mxu0 %v467_v9  ;;  %459 = vmatpush3.bf16.msra.mxu1 %v467_v9 }
  0x22   :  { %429 = vmatmul.mubr.bf16.vlgmr.msra.gmra.mrb[0].mxu0 %v470_v10  ;;  %437 = vmatmul.mubr.bf16.vlgmr.msra.gmra.mrb[0].mxu1 %v471_v11 }
  0x23   :  { %432 = vmatprep.mubr.bf16.mxu0 %v472_v12  ;;  %440 = vmatprep.mubr.bf16.mxu1 %v473_v13 }
  0x2a   :  { %433 = vmatmul.mubr.bf16.gmra.mrb[4].mxu0 %v474_v14  ;;  %441 = vmatmul.mubr.bf16.gmra.mrb[4].mxu1 %v475_v15 }
  0xf5   :  { %v430_v17 = vpop.f32.mrb[0].mxu0  ;;  %v438_v18 = vpop.f32.mrb[0].mxu1 }
  0xf6   :  { %v193_v19 = vadd.f32 %v430_v17, %v611_v16  ;;  %v225_v20 = vadd.f32 %v438_v18, %v611_v16  ;;  %v184_v21 = vpop.f32.mrb[1].mxu0  ;;  %v216_v22 = vpop.f32.mrb[1].mxu1 }
  0xf7   :  { %v185_v23 = vadd.f32 %v611_v16, %v184_v21  ;;  %v217_v24 = vadd.f32 %v611_v16, %v216_v22  ;;  %v431_v25 = vpop.f32.mrb[2].mxu0  ;;  %v439_v26 = vpop.f32.mrb[2].mxu1 }
  0xf8   :  { %v382_v27 = vmul.f32 -1.442695, %v193_v19  ;;  %v390_v28 = vmul.f32 -1.442695, %v225_v20  ;;  %v196_v29 = vadd.f32 %v431_v25, %v611_v16  ;;  %v228_v30 = vadd.f32 %v439_v26, %v611_v16  ;;  %v187_v31 = vpop.f32.mrb[3].mxu0  ;;  %v219_v32 = vpop.f32.mrb[3].mxu1 }
  0xf9   :  { %v380_v33 = vmul.f32 -1.442695, %v185_v23  ;;  %v388_v34 = vmul.f32 -1.442695, %v217_v24  ;;  %v188_v35 = vadd.f32 %v611_v16, %v187_v31  ;;  %v220_v36 = vadd.f32 %v611_v16, %v219_v32 }
  0xfa   :  { %476 = vpow2.f32 %v382_v27  ;;  %v383_v37 = vmul.f32 -1.442695, %v196_v29  ;;  %v391_v38 = vmul.f32 -1.442695, %v228_v30 }
  0xfb   :  { %478 = vpow2.f32 %v390_v28  ;;  %v381_v39 = vmul.f32 -1.442695, %v188_v35  ;;  %v389_v40 = vmul.f32 -1.442695, %v220_v36 }
  0xfc   :  { %480 = vpow2.f32 %v380_v33 }
  0xfd   :  { %482 = vpow2.f32 %v388_v34  ;;  %v434_v41 = vpop.f32.mrb[4].mxu0  ;;  %v442_v42 = vpop.f32.mrb[4].mxu1 }
  0xfe   :  { %484 = vpow2.f32 %v383_v37  ;;  %v209_v43 = vadd.f32 %v434_v41, %v611_v16  ;;  %v241_v44 = vadd.f32 %v442_v42, %v611_v16  ;;  %v200_v45 = vpop.f32.mrb[5].mxu0  ;;  %v232_v46 = vpop.f32.mrb[5].mxu1 }
  0xff   :  { %486 = vpow2.f32 %v391_v38  ;;  %v201_v47 = vadd.f32 %v611_v16, %v200_v45  ;;  %v233_v48 = vadd.f32 %v611_v16, %v232_v46  ;;  %v435_v49 = vpop.f32.mrb[6].mxu0  ;;  %v443_v50 = vpop.f32.mrb[6].mxu1 }
 0x100   :  { %488 = vpow2.f32 %v381_v39  ;;  %v386_v51 = vmul.f32 -1.442695, %v209_v43  ;;  %v394_v52 = vmul.f32 -1.442695, %v241_v44  ;;  %v212_v53 = vadd.f32 %v435_v49, %v611_v16  ;;  %v203_v54 = vpop.f32.mrb[7].mxu0  ;;  %v235_v55 = vpop.f32.mrb[7].mxu1 }
 0x101   :  { %490 = vpow2.f32 %v389_v40  ;;  %v384_v56 = vmul.f32 -1.442695, %v201_v47  ;;  %v392_v57 = vmul.f32 -1.442695, %v233_v48  ;;  %v244_v12 = vadd.f32 %v443_v50, %v611_v16 }
 0x102   :  { %492 = vpow2.f32 %v386_v51  ;;  %v387_v58 = vmul.f32 -1.442695, %v212_v53  ;;  %v204_v15 = vadd.f32 %v611_v16, %v203_v54  ;;  %v236_v19 = vadd.f32 %v611_v16, %v235_v55 }
 0x103   :  { %494 = vpow2.f32 %v394_v52  ;;  %v395_v24 = vmul.f32 -1.442695, %v244_v12 }
 0x104   :  { %v477_v59 = vpop.eup %476  ;;  %496 = vpow2.f32 %v384_v56  ;;  %v385_v27 = vmul.f32 -1.442695, %v204_v15  ;;  %v393_v29 = vmul.f32 -1.442695, %v236_v19 }
 0x105   :  { %v479_v60 = vpop.eup %478  ;;  %v297_v61 = vadd.f32 1.0, %v477_v59  ;;  %498 = vpow2.f32 %v392_v57 }
 0x106   :  { %v481_v62 = vpop.eup %480  ;;  %v305_v63 = vadd.f32 1.0, %v479_v60  ;;  %500 = vpow2.f32 %v387_v58 }
 0x107   :  { %v483_v0 = vpop.eup %482  ;;  %502 = vrcp.f32 %v297_v61  ;;  %v295_v1 = vadd.f32 1.0, %v481_v62 }
 0x108   :  { %v485_v2 = vpop.eup %484  ;;  %504 = vrcp.f32 %v305_v63  ;;  %v303_v3 = vadd.f32 1.0, %v483_v0 }
 0x109   :  { %v487_v4 = vpop.eup %486  ;;  %506 = vrcp.f32 %v295_v1  ;;  %v298_v5 = vadd.f32 1.0, %v485_v2 }
 0x10a   :  { %v489_v6 = vpop.eup %488  ;;  %508 = vrcp.f32 %v303_v3  ;;  %v306_v7 = vadd.f32 1.0, %v487_v4 }
 0x10b   :  { %v491_v8 = vpop.eup %490  ;;  %510 = vrcp.f32 %v298_v5  ;;  %v296_v9 = vadd.f32 1.0, %v489_v6 }
 0x10c   :  { %v493_v10 = vpop.eup %492  ;;  %512 = vrcp.f32 %v306_v7  ;;  %v304_v11 = vadd.f32 1.0, %v491_v8 }
 0x10d   :  { %v495_v13 = vpop.eup %494  ;;  %514 = vrcp.f32 %v296_v9  ;;  %v301_v14 = vadd.f32 1.0, %v493_v10 }
 0x10e   :  { %v497_v17 = vpop.eup %496  ;;  %516 = vrcp.f32 %v304_v11  ;;  %v309_v18 = vadd.f32 1.0, %v495_v13 }
 0x10f   :  { %v499_v20 = vpop.eup %498  ;;  %518 = vrcp.f32 %v301_v14  ;;  %v299_v21 = vadd.f32 1.0, %v497_v17 }
 0x110   :  { %v501_v22 = vpop.eup %500  ;;  %520 = vrcp.f32 %v309_v18  ;;  %v307_v23 = vadd.f32 1.0, %v499_v20 }
 0x111   :  { %v503_v25 = vpop.eup %502  ;;  %522 = vrcp.f32 %v299_v21  ;;  %v302_v26 = vadd.f32 1.0, %v501_v22 }
 0x112   :  { %v505_v28 = vpop.eup %504  ;;  %345 = vst [vmem:[%s680_s3 + $0x10] sm:$0xff] %v503_v25  ;;  %524 = vrcp.f32 %v307_v23 }
 0x113   :  { %v507_v30 = vpop.eup %506  ;;  %353 = vst [vmem:[%s680_s3 + $0x50] sm:$0xff] %v505_v28  ;;  %526 = vrcp.f32 %v302_v26 }
 0x114   :  { %v509_v16 = vpop.eup %508  ;;  %343 = vst [vmem:[%s680_s3] sm:$0xff] %v507_v30  ;;  %528 = vpow2.f32 %v395_v24 }
 0x115   :  { %v511_v31 = vpop.eup %510  ;;  %351 = vst [vmem:[%s680_s3 + $0x40] sm:$0xff] %v509_v16  ;;  %530 = vpow2.f32 %v385_v27 }
 0x116   :  { %v513_v32 = vpop.eup %512  ;;  %346 = vst [vmem:[%s680_s3 + $0x18] sm:$0xff] %v511_v31  ;;  %532 = vpow2.f32 %v393_v29 }
 0x117   :  { %v515_v33 = vpop.eup %514  ;;  %354 = vst [vmem:[%s680_s3 + $0x58] sm:$0xff] %v513_v32 }
 0x118   :  { %v517_v34 = vpop.eup %516  ;;  %344 = vst [vmem:[%s680_s3 + $0x8] sm:$0xff] %v515_v33 }
 0x119   :  { %v519_v35 = vpop.eup %518  ;;  %352 = vst [vmem:[%s680_s3 + $0x48] sm:$0xff] %v517_v34 }
 0x11a   :  { %v521_v36 = vpop.eup %520  ;;  %349 = vst [vmem:[%s680_s3 + $0x30] sm:$0xff] %v519_v35 }
 0x11b   :  { %v523_v37 = vpop.eup %522  ;;  %357 = vst [vmem:[%s680_s3 + $0x70] sm:$0xff] %v521_v36 }
 0x11c   :  { %v525_v38 = vpop.eup %524  ;;  %347 = vst [vmem:[%s680_s3 + $0x20] sm:$0xff] %v523_v37 }
 0x11d   :  { %v527_v39 = vpop.eup %526  ;;  %355 = vst [vmem:[%s680_s3 + $0x60] sm:$0xff] %v525_v38 }
 0x11e   :  { %v529_v40 = vpop.eup %528  ;;  %350 = vst [vmem:[%s680_s3 + $0x38] sm:$0xff] %v527_v39 }
 0x11f   :  { %v531_v41 = vpop.eup %530  ;;  %v310_v42 = vadd.f32 1.0, %v529_v40 }
 0x120   :  { %v533_v43 = vpop.eup %532  ;;  %v300_v44 = vadd.f32 1.0, %v531_v41 }
 0x121   :  { %534 = vrcp.f32 %v310_v42  ;;  %v308_v45 = vadd.f32 1.0, %v533_v43 }
 0x122   :  { %536 = vrcp.f32 %v300_v44 }
 0x123   :  { %538 = vrcp.f32 %v308_v45 }
 0x12b   :  { %v535_v46 = vpop.eup %534 }
 0x12c   :  { %v537_v47 = vpop.eup %536  ;;  %358 = vst [vmem:[%s680_s3 + $0x78] sm:$0xff] %v535_v46 }
 0x12d   :  { %v539_v48 = vpop.eup %538  ;;  %348 = vst [vmem:[%s680_s3 + $0x28] sm:$0xff] %v537_v47 }
 0x12e   :  { %356 = vst [vmem:[%s680_s3 + $0x68] sm:$0xff] %v539_v48 }

</bundles_post_ra>
